<compile_context>
chip_gen: v7x
topology: tpu7x:2x2x1
jax: 0.10.0
libtpu: 0.0.40
codegen_flags: <defaults>
</compile_context>

<pallas_src>
import jax
import jax.numpy as jnp
from jax.experimental import pallas as pl
from jax.experimental.pallas import tpu as pltpu

TEXT_LOSS_WEIGHT = 0.7    # loss_text   = DiceLoss(loss_weight=0.7)
KERNEL_LOSS_WEIGHT = 0.3  # loss_kernel = DiceLoss(loss_weight=0.3)
EPS = 1e-6
LANES = 128


def _build_kernel(num_kernels):
    """Returns the Pallas kernel body for K = num_kernels kernel channels."""
    K = num_kernels
    # accumulator layout in the (N_ACC, BB, 128) scratch:
    IDX_TD = 0                # text dice: a, b, c
    IDX_KD = 3                # kernel dice: channel i at 3 + 3*i (a, b, c)
    IDX_TI = 3 + 3 * K        # text IoU: inter1, union1, valid
    IDX_KI = IDX_TI + 3       # kernel IoU: inter1, union1, valid
    N_ACC = IDX_KI + 3

    def kernel(out_ref, gt_texts_ref, masks_ref, gt_kernels_ref,
               thr_ref, flag_ref,
               loss_text_ref, iou_text_ref, loss_kernels_ref, iou_kernel_ref,
               acc_ref):
        t = pl.program_id(1)

        @pl.when(t == 0)
        def _init():
            acc_ref[...] = jnp.zeros_like(acc_ref)

        texts = out_ref[:, 0, :, :].astype(jnp.float32)      # (BB, TR, 128)
        gt_t = gt_texts_ref[...].astype(jnp.float32)
        tmask = masks_ref[...].astype(jnp.float32)
        thr = thr_ref[...].astype(jnp.float32)               # (BB, 1, 1)
        flag = flag_ref[...].astype(jnp.float32)              # (BB, 1, 1)

        gt_pos = gt_t > 0.5
        valid = tmask > 0.5

        # OHEM-selected mask.  NOTE: `thr` may be NaN / arbitrary when flag == 0
        # (no positives or no negatives); that branch is fully masked out by the
        # jnp.where(flag > 0.5, ...), matching the PyTorch fallback to training_mask.
        ohem_sel = jnp.where(
            jnp.logical_and(jnp.logical_or(texts >= thr, gt_pos), valid), 1.0, 0.0)
        sel_text = jnp.where(flag > 0.5, ohem_sel, tmask)

        # --- text dice partials (binary target/mask: t*t == t, m*m == m) ---
        s = jax.nn.sigmoid(texts)
        acc_ref[IDX_TD + 0] += jnp.sum(s * gt_t * sel_text, axis=1)
        acc_ref[IDX_TD + 1] += jnp.sum(s * s * sel_text, axis=1)
        acc_ref[IDX_TD + 2] += jnp.sum(gt_t * sel_text, axis=1)

        # --- text IoU partials: class-1 inter/union + valid count only ---
        t_pos = texts > 0.0
        acc_ref[IDX_TI + 0] += jnp.sum(
            jnp.where(t_pos & gt_pos & valid, 1.0, 0.0), axis=1)
        acc_ref[IDX_TI + 1] += jnp.sum(
            jnp.where((t_pos | gt_pos) & valid, 1.0, 0.0), axis=1)
        acc_ref[IDX_TI + 2] += jnp.sum(jnp.where(valid, 1.0, 0.0), axis=1)

        # --- kernel dice partials (mask = gt_texts * training_masks, binary) ---
        sel_k = gt_t * tmask
        k_last = None
        gk_last = None
        for i in range(K):  # small static channel count
            k_i = out_ref[:, 1 + i, :, :].astype(jnp.float32)
            gk_i = gt_kernels_ref[:, i, :, :].astype(jnp.float32)
            si = jax.nn.sigmoid(k_i)
            acc_ref[IDX_KD + 3 * i + 0] += jnp.sum(si * gk_i * sel_k, axis=1)
            acc_ref[IDX_KD + 3 * i + 1] += jnp.sum(si * si * sel_k, axis=1)
            acc_ref[IDX_KD + 3 * i + 2] += jnp.sum(gk_i * sel_k, axis=1)
            k_last, gk_last = k_i, gk_i

        # --- kernel IoU partials (last channel, mask = training_masks*gt_texts) ---
        kvalid = valid & gt_pos
        k_pos = k_last > 0.0
        gk_pos = gk_last > 0.5
        acc_ref[IDX_KI + 0] += jnp.sum(
            jnp.where(k_pos & gk_pos & kvalid, 1.0, 0.0), axis=1)
        acc_ref[IDX_KI + 1] += jnp.sum(
            jnp.where((k_pos | gk_pos) & kvalid, 1.0, 0.0), axis=1)
        acc_ref[IDX_KI + 2] += jnp.sum(jnp.where(kvalid, 1.0, 0.0), axis=1)

        # --- finalize: single cross-lane reduce + scalar math on the last tile ---
        @pl.when(t == pl.num_programs(1) - 1)
        def _finalize():
            def red(i):                                      # (BB, 1)
                return jnp.sum(acc_ref[i], axis=-1, keepdims=True)

            def dice(base):
                a, b, c = red(base), red(base + 1), red(base + 2)
                return 1.0 - (2.0 * a) / (b + c + 0.002)     # (+0.001)+(+0.001)

            def iou2(base):
                inter1, union1, vcnt = red(base), red(base + 1), red(base + 2)
                inter0 = vcnt - union1                        # binary classes
                union0 = vcnt - inter1
                return 0.5 * (inter0 / (union0 + EPS) + inter1 / (union1 + EPS))

            loss_text_ref[...] = (TEXT_LOSS_WEIGHT * dice(IDX_TD))[:, :, None]
            iou_text_ref[...] = iou2(IDX_TI)[:, :, None]

            lk = jnp.zeros((loss_kernels_ref.shape[0], 1), jnp.float32)
            for i in range(K):
                lk = lk + KERNEL_LOSS_WEIGHT * dice(IDX_KD + 3 * i)
            loss_kernels_ref[...] = (lk / float(K))[:, :, None]
            iou_kernel_ref[...] = iou2(IDX_KI)[:, :, None]

    return kernel, N_ACC


def _kth_largest(scores, select, k):
    """Exact per-row k-th largest of scores restricted to `select`, without sorting.

    scores: (B, N) f32, select: (B, N) bool, k: (B,) int (1 <= k <= sum(select)).
    32-step binary search on an order-preserving uint32 key: O(32*N) streaming
    compares+sums instead of an O(N log N) sort.
    """
    bits = jax.lax.bitcast_convert_type(scores.astype(jnp.float32), jnp.uint32)
    sign = jnp.uint32(0x80000000)
    key = jnp.where(bits >= sign, jnp.bitwise_not(bits), bits | sign)
    key = jnp.where(select, key, jnp.uint32(0))    # unselected -> minimal key
    k = k.astype(jnp.int32)

    def body(i, prefix):
        shift = jnp.uint32(31) - i.astype(jnp.uint32)
        cand = prefix | jax.lax.shift_left(jnp.uint32(1), shift)
        cnt = jnp.sum((key >= cand[:, None]).astype(jnp.int32), axis=-1)
        return jnp.where(cnt >= k, cand, prefix)

    kth_key = jax.lax.fori_loop(0, 32, body, jnp.zeros(scores.shape[:1], jnp.uint32))
    kth_bits = jnp.where(kth_key >= sign, kth_key ^ sign, jnp.bitwise_not(kth_key))
    return jax.lax.bitcast_convert_type(kth_bits, jnp.float32)


def _pick_tile_rows(R, bytes_per_row, budget_bytes=20 << 20):
    """Largest row-tile that (double-buffered) fits the VMEM budget, is a multiple
    of 8 and divides R; fall back to R (single block) otherwise."""
    if R <= 8:
        return R
    max_rows = min(R, max(8, int(budget_bytes // max(1, 2 * bytes_per_row))))
    tr = (max_rows // 8) * 8
    while tr >= 8:
        if R % tr == 0:
            return tr
        tr -= 8
    return R


@jax.jit
def psenet_loss(out, gt_texts, gt_kernels, training_masks):
    """out: (B, C, H, W) with channel 0 = text map, channels 1: = kernel maps."""
    B, C, H, W = out.shape
    K = C - 1
    assert K >= 1
    HW = H * W

    # ---------- OHEM threshold (wrapper side; data-dependent k-th statistic) ----------
    # TODO(synk): the data-dependent k-th order statistic has no clean in-kernel Pallas
    # equivalent; it is computed here as a 32-pass streaming bit search (no sort).
    texts_flat = out[:, 0, :, :].reshape(B, HW).astype(jnp.float32)
    gt_flat = gt_texts.reshape(B, HW)
    msk_flat2 = training_masks.reshape(B, HW)

    pos = gt_flat > 0.5
    neg = jnp.logical_not(pos)
    pos_num = jnp.sum(jnp.logical_and(pos, msk_flat2 > 0.5), axis=-1).astype(jnp.int32)
    neg_total = jnp.sum(neg, axis=-1).astype(jnp.int32)
    neg_num = jnp.minimum(pos_num * 3, neg_total)
    use_ohem = jnp.logical_and(pos_num > 0, neg_num > 0)
    thr = _kth_largest(texts_flat, neg, jnp.maximum(neg_num, 1))  # masked by flag if unused
    flag = use_ohem.astype(jnp.float32)

    thr3 = thr.reshape(B, 1, 1).astype(jnp.float32)
    flag3 = flag.reshape(B, 1, 1)

    # ---------- layout: (B, ..., HW) -> (B, ..., R, 128), lane-major ----------
    pad = (-HW) % LANES
    out_flat = out.reshape(B, C, HW)
    gtk_flat = gt_kernels.reshape(B, K, HW)
    gtt_flat = gt_texts.reshape(B, HW)
    msk_flat = training_masks.reshape(B, HW)
    if pad:
        # zero padding contributes nothing: every partial term is gated by the masks.
        out_flat = jnp.pad(out_flat, ((0, 0), (0, 0), (0, pad)))
        gtk_flat = jnp.pad(gtk_flat, ((0, 0), (0, 0), (0, pad)))
        gtt_flat = jnp.pad(gtt_flat, ((0, 0), (0, pad)))
        msk_flat = jnp.pad(msk_flat, ((0, 0), (0, pad)))
    R = (HW + pad) // LANES
    out4 = out_flat.reshape(B, C, R, LANES)
    gtk4 = gtk_flat.reshape(B, K, R, LANES)
    gtt3 = gtt_flat.reshape(B, R, LANES)
    msk3 = msk_flat.reshape(B, R, LANES)

    # ---------- grid / tiling ----------
    BB = 8 if (B > 8 and B % 8 == 0) else B
    nb = B // BB
    bytes_per_row = BB * LANES * (
        C * out4.dtype.itemsize + K * gtk4.dtype.itemsize
        + gtt3.dtype.itemsize + msk3.dtype.itemsize)
    TR = _pick_tile_rows(R, bytes_per_row)
    nt = R // TR

    kernel, n_acc = _build_kernel(K)

    est_vmem = (2 * bytes_per_row * TR          # double-buffered input tiles
                + n_acc * BB * LANES * 4        # accumulators
                + 8 * BB * 4                    # tiny outputs + thr/flag
                + (4 << 20))                    # headroom
    vmem_limit = int(min(48 << 20, max(8 << 20, est_vmem)))

    in_specs = [
        pl.BlockSpec((BB, C, TR, LANES), lambda b, t: (b, 0, t, 0)),
        pl.BlockSpec((BB, TR, LANES), lambda b, t: (b, t, 0)),
        pl.BlockSpec((BB, TR, LANES), lambda b, t: (b, t, 0)),
        pl.BlockSpec((BB, K, TR, LANES), lambda b, t: (b, 0, t, 0)),
        # per-image scalars: block index constant over t -> stays VMEM-resident
        pl.BlockSpec((BB, 1, 1), lambda b, t: (b, 0, 0)),
        pl.BlockSpec((BB, 1, 1), lambda b, t: (b, 0, 0)),
    ]
    out_specs = tuple(
        pl.BlockSpec((BB, 1, 1), lambda b, t: (b, 0, 0)) for _ in range(4))
    out_shapes = tuple(
        jax.ShapeDtypeStruct((B, 1, 1), jnp.float32) for _ in range(4))

    loss_text, iou_text, loss_kernels, iou_kernel = pl.pallas_call(
        kernel,
        out_shape=out_shapes,
        grid=(nb, nt),
        in_specs=in_specs,
        out_specs=out_specs,
        scratch_shapes=[pltpu.VMEM((n_acc, BB, LANES), jnp.float32)],
        compiler_params=pltpu.CompilerParams(
            dimension_semantics=("parallel", "arbitrary"),
            vmem_limit_bytes=vmem_limit),
    )(out4, gtt3, msk3, gtk4, thr3, flag3)

    return dict(
        loss_text=loss_text.reshape(B),
        iou_text=iou_text.reshape(B),
        loss_kernels=loss_kernels.reshape(B),
        iou_kernel=iou_kernel.reshape(B),
    )


if __name__ == "__main__":
    key = jax.random.PRNGKey(0)
    B, C, H, W = 2, 4, 16, 16   # channel 0 = text map, 3 kernel maps
    K = C - 1
    k1, k2, k3, k4 = jax.random.split(key, 4)

    out = jax.random.normal(k1, (B, C, H, W), dtype=jnp.float32)
    gt_texts = (jax.random.uniform(k2, (B, H, W)) > 0.5).astype(jnp.float32)
    gt_kernels = (jax.random.uniform(k3, (B, K, H, W)) > 0.5).astype(jnp.float32)
    training_masks = (jax.random.uniform(k4, (B, H, W)) > 0.2).astype(jnp.float32)

    losses = psenet_loss(out, gt_texts, gt_kernels, training_masks)
    jax.block_until_ready(losses)
    print("KERNEL_OK")
</pallas_src>

<mosaic_0001>
module attributes {stable_mosaic.version = 11 : i64} {
  func.func @kernel(%arg0: i32, %arg1: i32, %arg2: memref<2x4x2x128xf32, #tpu.memory_space<vmem>>, %arg3: memref<2x2x128xf32, #tpu.memory_space<vmem>>, %arg4: memref<2x2x128xf32, #tpu.memory_space<vmem>>, %arg5: memref<2x3x2x128xf32, #tpu.memory_space<vmem>>, %arg6: memref<2x1x1xf32, #tpu.memory_space<vmem>>, %arg7: memref<2x1x1xf32, #tpu.memory_space<vmem>>, %arg8: memref<2x1x1xf32, #tpu.memory_space<vmem>>, %arg9: memref<2x1x1xf32, #tpu.memory_space<vmem>>, %arg10: memref<2x1x1xf32, #tpu.memory_space<vmem>>, %arg11: memref<2x1x1xf32, #tpu.memory_space<vmem>>, %arg12: memref<18x2x128xf32, #tpu.memory_space<vmem>>) attributes {dimension_semantics = [#tpu.dimension_semantics<parallel>, #tpu.dimension_semantics<arbitrary>], iteration_bounds = array<i64: 1, 1>, scalar_prefetch = 0 : i64, scratch_operands = 1 : i64, tpu.core_type = #tpu.core_type<tc>, window_params = [{transform_indices = @transform_0, window_bounds = array<i64: 2, 4, 2, 128>}, {transform_indices = @transform_1, window_bounds = array<i64: 2, 2, 128>}, {transform_indices = @transform_2, window_bounds = array<i64: 2, 2, 128>}, {transform_indices = @transform_3, window_bounds = array<i64: 2, 3, 2, 128>}, {transform_indices = @transform_4, window_bounds = array<i64: 2, 1, 1>}, {transform_indices = @transform_5, window_bounds = array<i64: 2, 1, 1>}, {transform_indices = @transform_6, window_bounds = array<i64: 2, 1, 1>}, {transform_indices = @transform_7, window_bounds = array<i64: 2, 1, 1>}, {transform_indices = @transform_8, window_bounds = array<i64: 2, 1, 1>}, {transform_indices = @transform_9, window_bounds = array<i64: 2, 1, 1>}]} {
    %c0_i32 = arith.constant 0 : i32
    %0 = arith.cmpi eq, %arg1, %c0_i32 : i32
    %1 = arith.extui %0 : i1 to i32
    %c0_i32_0 = arith.constant 0 : i32
    %2 = arith.cmpi ne, %1, %c0_i32_0 : i32
    scf.if %2 {
      %cst_174 = arith.constant 0.000000e+00 : f32
      %240 = vector.broadcast %cst_174 : f32 to vector<18x2x128xf32>
      %c0_175 = arith.constant 0 : index
      %c0_176 = arith.constant 0 : index
      %c0_177 = arith.constant 0 : index
      %241 = vector.load %arg12[%c0_175, %c0_176, %c0_177] : memref<18x2x128xf32, #tpu.memory_space<vmem>>, vector<18x2x128xf32>
      tpu.vector_store %arg12[%c0_175, %c0_176, %c0_177], %240 {strides = array<i32>} : memref<18x2x128xf32, #tpu.memory_space<vmem>>, vector<18x2x128xf32>,
    } else {
    }
    %c0 = arith.constant 0 : index
    %c0_1 = arith.constant 0 : index
    %c0_2 = arith.constant 0 : index
    %c0_3 = arith.constant 0 : index
    %3 = vector.load %arg2[%c0, %c0_1, %c0_2, %c0_3] : memref<2x4x2x128xf32, #tpu.memory_space<vmem>>, vector<2x1x2x128xf32>
    %4 = vector.shape_cast %3 : vector<2x1x2x128xf32> to vector<2x2x128xf32>
    %c0_4 = arith.constant 0 : index
    %c0_5 = arith.constant 0 : index
    %c0_6 = arith.constant 0 : index
    %5 = vector.load %arg3[%c0_4, %c0_5, %c0_6] : memref<2x2x128xf32, #tpu.memory_space<vmem>>, vector<2x2x128xf32>
    %c0_7 = arith.constant 0 : index
    %c0_8 = arith.constant 0 : index
    %c0_9 = arith.constant 0 : index
    %6 = vector.load %arg4[%c0_7, %c0_8, %c0_9] : memref<2x2x128xf32, #tpu.memory_space<vmem>>, vector<2x2x128xf32>
    %c0_10 = arith.constant 0 : index
    %c0_11 = arith.constant 0 : index
    %c0_12 = arith.constant 0 : index
    %7 = vector.load %arg6[%c0_10, %c0_11, %c0_12] : memref<2x1x1xf32, #tpu.memory_space<vmem>>, vector<2x1x1xf32>
    %c0_13 = arith.constant 0 : index
    %c0_14 = arith.constant 0 : index
    %c0_15 = arith.constant 0 : index
    %8 = vector.load %arg7[%c0_13, %c0_14, %c0_15] : memref<2x1x1xf32, #tpu.memory_space<vmem>>, vector<2x1x1xf32>
    %cst = arith.constant 5.000000e-01 : f32
    %9 = vector.broadcast %cst : f32 to vector<2x2x128xf32>
    %10 = arith.cmpf ogt, %5, %9 : vector<2x2x128xf32>
    %cst_16 = arith.constant 5.000000e-01 : f32
    %11 = vector.broadcast %cst_16 : f32 to vector<2x2x128xf32>
    %12 = arith.cmpf ogt, %6, %11 : vector<2x2x128xf32>
    %13 = vector.broadcast %7 : vector<2x1x1xf32> to vector<2x2x128xf32>
    %14 = arith.cmpf oge, %4, %13 : vector<2x2x128xf32>
    %15 = arith.ori %14, %10 : vector<2x2x128xi1>
    %16 = arith.andi %15, %12 : vector<2x2x128xi1>
    %cst_17 = arith.constant 1.000000e+00 : f32
    %cst_18 = arith.constant 0.000000e+00 : f32
    %17 = vector.broadcast %cst_17 : f32 to vector<2x2x128xf32>
    %18 = vector.broadcast %cst_18 : f32 to vector<2x2x128xf32>
    %19 = arith.select %16, %17, %18 : vector<2x2x128xi1>, vector<2x2x128xf32>
    %cst_19 = arith.constant 5.000000e-01 : f32
    %20 = vector.broadcast %cst_19 : f32 to vector<2x1x1xf32>
    %21 = arith.cmpf ogt, %8, %20 : vector<2x1x1xf32>
    %22 = vector.shape_cast %21 : vector<2x1x1xi1> to vector<2x1x1xi1>
    %23 = vector.broadcast %22 : vector<2x1x1xi1> to vector<2x2x128xi1>
    %24 = arith.select %23, %19, %6 : vector<2x2x128xi1>, vector<2x2x128xf32>
    %25 = arith.negf %4 : vector<2x2x128xf32>
    %26 = math.exp %25 : vector<2x2x128xf32>
    %cst_20 = arith.constant 1.000000e+00 : f32
    %27 = vector.broadcast %cst_20 : f32 to vector<2x2x128xf32>
    %28 = arith.addf %27, %26 : vector<2x2x128xf32>
    %29 = arith.divf %27, %28 : vector<2x2x128xf32>
    %c0_21 = arith.constant 0 : index
    %c0_22 = arith.constant 0 : index
    %c0_23 = arith.constant 0 : index
    %30 = vector.load %arg12[%c0_21, %c0_22, %c0_23] : memref<18x2x128xf32, #tpu.memory_space<vmem>>, vector<1x2x128xf32>
    %31 = vector.shape_cast %30 : vector<1x2x128xf32> to vector<2x128xf32>
    %32 = arith.mulf %29, %5 : vector<2x2x128xf32>
    %33 = arith.mulf %32, %24 : vector<2x2x128xf32>
    %cst_24 = arith.constant dense<0.000000e+00> : vector<2x128xf32>
    %34 = vector.multi_reduction <add>, %33, %cst_24 [1] : vector<2x2x128xf32> to vector<2x128xf32>
    %35 = arith.addf %31, %34 : vector<2x128xf32>
    %c0_25 = arith.constant 0 : index
    %c0_26 = arith.constant 0 : index
    %c0_27 = arith.constant 0 : index
    %36 = vector.load %arg12[%c0_25, %c0_26, %c0_27] : memref<18x2x128xf32, #tpu.memory_space<vmem>>, vector<1x2x128xf32>
    %37 = vector.shape_cast %36 : vector<1x2x128xf32> to vector<2x128xf32>
    %38 = vector.shape_cast %35 : vector<2x128xf32> to vector<1x2x128xf32>
    tpu.vector_store %arg12[%c0_25, %c0_26, %c0_27], %38 {strides = array<i32>} : memref<18x2x128xf32, #tpu.memory_space<vmem>>, vector<1x2x128xf32>,
    %c1 = arith.constant 1 : index
    %c0_28 = arith.constant 0 : index
    %c0_29 = arith.constant 0 : index
    %39 = vector.load %arg12[%c1, %c0_28, %c0_29] : memref<18x2x128xf32, #tpu.memory_space<vmem>>, vector<1x2x128xf32>
    %40 = vector.shape_cast %39 : vector<1x2x128xf32> to vector<2x128xf32>
    %41 = arith.mulf %29, %29 : vector<2x2x128xf32>
    %42 = arith.mulf %41, %24 : vector<2x2x128xf32>
    %cst_30 = arith.constant dense<0.000000e+00> : vector<2x128xf32>
    %43 = vector.multi_reduction <add>, %42, %cst_30 [1] : vector<2x2x128xf32> to vector<2x128xf32>
    %44 = arith.addf %40, %43 : vector<2x128xf32>
    %c1_31 = arith.constant 1 : index
    %c0_32 = arith.constant 0 : index
    %c0_33 = arith.constant 0 : index
    %45 = vector.load %arg12[%c1_31, %c0_32, %c0_33] : memref<18x2x128xf32, #tpu.memory_space<vmem>>, vector<1x2x128xf32>
    %46 = vector.shape_cast %45 : vector<1x2x128xf32> to vector<2x128xf32>
    %47 = vector.shape_cast %44 : vector<2x128xf32> to vector<1x2x128xf32>
    tpu.vector_store %arg12[%c1_31, %c0_32, %c0_33], %47 {strides = array<i32>} : memref<18x2x128xf32, #tpu.memory_space<vmem>>, vector<1x2x128xf32>,
    %c2 = arith.constant 2 : index
    %c0_34 = arith.constant 0 : index
    %c0_35 = arith.constant 0 : index
    %48 = vector.load %arg12[%c2, %c0_34, %c0_35] : memref<18x2x128xf32, #tpu.memory_space<vmem>>, vector<1x2x128xf32>
    %49 = vector.shape_cast %48 : vector<1x2x128xf32> to vector<2x128xf32>
    %50 = arith.mulf %5, %24 : vector<2x2x128xf32>
    %cst_36 = arith.constant dense<0.000000e+00> : vector<2x128xf32>
    %51 = vector.multi_reduction <add>, %50, %cst_36 [1] : vector<2x2x128xf32> to vector<2x128xf32>
    %52 = arith.addf %49, %51 : vector<2x128xf32>
    %c2_37 = arith.constant 2 : index
    %c0_38 = arith.constant 0 : index
    %c0_39 = arith.constant 0 : index
    %53 = vector.load %arg12[%c2_37, %c0_38, %c0_39] : memref<18x2x128xf32, #tpu.memory_space<vmem>>, vector<1x2x128xf32>
    %54 = vector.shape_cast %53 : vector<1x2x128xf32> to vector<2x128xf32>
    %55 = vector.shape_cast %52 : vector<2x128xf32> to vector<1x2x128xf32>
    tpu.vector_store %arg12[%c2_37, %c0_38, %c0_39], %55 {strides = array<i32>} : memref<18x2x128xf32, #tpu.memory_space<vmem>>, vector<1x2x128xf32>,
    %cst_40 = arith.constant 0.000000e+00 : f32
    %56 = vector.broadcast %cst_40 : f32 to vector<2x2x128xf32>
    %57 = arith.cmpf ogt, %4, %56 : vector<2x2x128xf32>
    %c12 = arith.constant 12 : index
    %c0_41 = arith.constant 0 : index
    %c0_42 = arith.constant 0 : index
    %58 = vector.load %arg12[%c12, %c0_41, %c0_42] : memref<18x2x128xf32, #tpu.memory_space<vmem>>, vector<1x2x128xf32>
    %59 = vector.shape_cast %58 : vector<1x2x128xf32> to vector<2x128xf32>
    %60 = arith.andi %57, %10 : vector<2x2x128xi1>
    %61 = arith.andi %60, %12 : vector<2x2x128xi1>
    %cst_43 = arith.constant 1.000000e+00 : f32
    %cst_44 = arith.constant 0.000000e+00 : f32
    %62 = vector.broadcast %cst_43 : f32 to vector<2x2x128xf32>
    %63 = vector.broadcast %cst_44 : f32 to vector<2x2x128xf32>
    %64 = arith.select %61, %62, %63 : vector<2x2x128xi1>, vector<2x2x128xf32>
    %cst_45 = arith.constant dense<0.000000e+00> : vector<2x128xf32>
    %65 = vector.multi_reduction <add>, %64, %cst_45 [1] : vector<2x2x128xf32> to vector<2x128xf32>
    %66 = arith.addf %59, %65 : vector<2x128xf32>
    %c12_46 = arith.constant 12 : index
    %c0_47 = arith.constant 0 : index
    %c0_48 = arith.constant 0 : index
    %67 = vector.load %arg12[%c12_46, %c0_47, %c0_48] : memref<18x2x128xf32, #tpu.memory_space<vmem>>, vector<1x2x128xf32>
    %68 = vector.shape_cast %67 : vector<1x2x128xf32> to vector<2x128xf32>
    %69 = vector.shape_cast %66 : vector<2x128xf32> to vector<1x2x128xf32>
    tpu.vector_store %arg12[%c12_46, %c0_47, %c0_48], %69 {strides = array<i32>} : memref<18x2x128xf32, #tpu.memory_space<vmem>>, vector<1x2x128xf32>,
    %c13 = arith.constant 13 : index
    %c0_49 = arith.constant 0 : index
    %c0_50 = arith.constant 0 : index
    %70 = vector.load %arg12[%c13, %c0_49, %c0_50] : memref<18x2x128xf32, #tpu.memory_space<vmem>>, vector<1x2x128xf32>
    %71 = vector.shape_cast %70 : vector<1x2x128xf32> to vector<2x128xf32>
    %72 = arith.ori %57, %10 : vector<2x2x128xi1>
    %73 = arith.andi %72, %12 : vector<2x2x128xi1>
    %cst_51 = arith.constant 1.000000e+00 : f32
    %cst_52 = arith.constant 0.000000e+00 : f32
    %74 = vector.broadcast %cst_51 : f32 to vector<2x2x128xf32>
    %75 = vector.broadcast %cst_52 : f32 to vector<2x2x128xf32>
    %76 = arith.select %73, %74, %75 : vector<2x2x128xi1>, vector<2x2x128xf32>
    %cst_53 = arith.constant dense<0.000000e+00> : vector<2x128xf32>
    %77 = vector.multi_reduction <add>, %76, %cst_53 [1] : vector<2x2x128xf32> to vector<2x128xf32>
    %78 = arith.addf %71, %77 : vector<2x128xf32>
    %c13_54 = arith.constant 13 : index
    %c0_55 = arith.constant 0 : index
    %c0_56 = arith.constant 0 : index
    %79 = vector.load %arg12[%c13_54, %c0_55, %c0_56] : memref<18x2x128xf32, #tpu.memory_space<vmem>>, vector<1x2x128xf32>
    %80 = vector.shape_cast %79 : vector<1x2x128xf32> to vector<2x128xf32>
    %81 = vector.shape_cast %78 : vector<2x128xf32> to vector<1x2x128xf32>
    tpu.vector_store %arg12[%c13_54, %c0_55, %c0_56], %81 {strides = array<i32>} : memref<18x2x128xf32, #tpu.memory_space<vmem>>, vector<1x2x128xf32>,
    %c14 = arith.constant 14 : index
    %c0_57 = arith.constant 0 : index
    %c0_58 = arith.constant 0 : index
    %82 = vector.load %arg12[%c14, %c0_57, %c0_58] : memref<18x2x128xf32, #tpu.memory_space<vmem>>, vector<1x2x128xf32>
    %83 = vector.shape_cast %82 : vector<1x2x128xf32> to vector<2x128xf32>
    %cst_59 = arith.constant 1.000000e+00 : f32
    %cst_60 = arith.constant 0.000000e+00 : f32
    %84 = vector.broadcast %cst_59 : f32 to vector<2x2x128xf32>
    %85 = vector.broadcast %cst_60 : f32 to vector<2x2x128xf32>
    %86 = arith.select %12, %84, %85 : vector<2x2x128xi1>, vector<2x2x128xf32>
    %cst_61 = arith.constant dense<0.000000e+00> : vector<2x128xf32>
    %87 = vector.multi_reduction <add>, %86, %cst_61 [1] : vector<2x2x128xf32> to vector<2x128xf32>
    %88 = arith.addf %83, %87 : vector<2x128xf32>
    %c14_62 = arith.constant 14 : index
    %c0_63 = arith.constant 0 : index
    %c0_64 = arith.constant 0 : index
    %89 = vector.load %arg12[%c14_62, %c0_63, %c0_64] : memref<18x2x128xf32, #tpu.memory_space<vmem>>, vector<1x2x128xf32>
    %90 = vector.shape_cast %89 : vector<1x2x128xf32> to vector<2x128xf32>
    %91 = vector.shape_cast %88 : vector<2x128xf32> to vector<1x2x128xf32>
    tpu.vector_store %arg12[%c14_62, %c0_63, %c0_64], %91 {strides = array<i32>} : memref<18x2x128xf32, #tpu.memory_space<vmem>>, vector<1x2x128xf32>,
    %92 = arith.mulf %5, %6 : vector<2x2x128xf32>
    %c0_65 = arith.constant 0 : index
    %c1_66 = arith.constant 1 : index
    %c0_67 = arith.constant 0 : index
    %c0_68 = arith.constant 0 : index
    %93 = vector.load %arg2[%c0_65, %c1_66, %c0_67, %c0_68] : memref<2x4x2x128xf32, #tpu.memory_space<vmem>>, vector<2x1x2x128xf32>
    %94 = vector.shape_cast %93 : vector<2x1x2x128xf32> to vector<2x2x128xf32>
    %c0_69 = arith.constant 0 : index
    %c0_70 = arith.constant 0 : index
    %c0_71 = arith.constant 0 : index
    %c0_72 = arith.constant 0 : index
    %95 = vector.load %arg5[%c0_69, %c0_70, %c0_71, %c0_72] : memref<2x3x2x128xf32, #tpu.memory_space<vmem>>, vector<2x1x2x128xf32>
    %96 = vector.shape_cast %95 : vector<2x1x2x128xf32> to vector<2x2x128xf32>
    %97 = arith.negf %94 : vector<2x2x128xf32>
    %98 = math.exp %97 : vector<2x2x128xf32>
    %cst_73 = arith.constant 1.000000e+00 : f32
    %99 = vector.broadcast %cst_73 : f32 to vector<2x2x128xf32>
    %100 = arith.addf %99, %98 : vector<2x2x128xf32>
    %101 = arith.divf %99, %100 : vector<2x2x128xf32>
    %c3 = arith.constant 3 : index
    %c0_74 = arith.constant 0 : index
    %c0_75 = arith.constant 0 : index
    %102 = vector.load %arg12[%c3, %c0_74, %c0_75] : memref<18x2x128xf32, #tpu.memory_space<vmem>>, vector<1x2x128xf32>
    %103 = vector.shape_cast %102 : vector<1x2x128xf32> to vector<2x128xf32>
    %104 = arith.mulf %101, %96 : vector<2x2x128xf32>
    %105 = arith.mulf %104, %92 : vector<2x2x128xf32>
    %cst_76 = arith.constant dense<0.000000e+00> : vector<2x128xf32>
    %106 = vector.multi_reduction <add>, %105, %cst_76 [1] : vector<2x2x128xf32> to vector<2x128xf32>
    %107 = arith.addf %103, %106 : vector<2x128xf32>
    %c3_77 = arith.constant 3 : index
    %c0_78 = arith.constant 0 : index
    %c0_79 = arith.constant 0 : index
    %108 = vector.load %arg12[%c3_77, %c0_78, %c0_79] : memref<18x2x128xf32, #tpu.memory_space<vmem>>, vector<1x2x128xf32>
    %109 = vector.shape_cast %108 : vector<1x2x128xf32> to vector<2x128xf32>
    %110 = vector.shape_cast %107 : vector<2x128xf32> to vector<1x2x128xf32>
    tpu.vector_store %arg12[%c3_77, %c0_78, %c0_79], %110 {strides = array<i32>} : memref<18x2x128xf32, #tpu.memory_space<vmem>>, vector<1x2x128xf32>,
    %c4 = arith.constant 4 : index
    %c0_80 = arith.constant 0 : index
    %c0_81 = arith.constant 0 : index
    %111 = vector.load %arg12[%c4, %c0_80, %c0_81] : memref<18x2x128xf32, #tpu.memory_space<vmem>>, vector<1x2x128xf32>
    %112 = vector.shape_cast %111 : vector<1x2x128xf32> to vector<2x128xf32>
    %113 = arith.mulf %101, %101 : vector<2x2x128xf32>
    %114 = arith.mulf %113, %92 : vector<2x2x128xf32>
    %cst_82 = arith.constant dense<0.000000e+00> : vector<2x128xf32>
    %115 = vector.multi_reduction <add>, %114, %cst_82 [1] : vector<2x2x128xf32> to vector<2x128xf32>
    %116 = arith.addf %112, %115 : vector<2x128xf32>
    %c4_83 = arith.constant 4 : index
    %c0_84 = arith.constant 0 : index
    %c0_85 = arith.constant 0 : index
    %117 = vector.load %arg12[%c4_83, %c0_84, %c0_85] : memref<18x2x128xf32, #tpu.memory_space<vmem>>, vector<1x2x128xf32>
    %118 = vector.shape_cast %117 : vector<1x2x128xf32> to vector<2x128xf32>
    %119 = vector.shape_cast %116 : vector<2x128xf32> to vector<1x2x128xf32>
    tpu.vector_store %arg12[%c4_83, %c0_84, %c0_85], %119 {strides = array<i32>} : memref<18x2x128xf32, #tpu.memory_space<vmem>>, vector<1x2x128xf32>,
    %c5 = arith.constant 5 : index
    %c0_86 = arith.constant 0 : index
    %c0_87 = arith.constant 0 : index
    %120 = vector.load %arg12[%c5, %c0_86, %c0_87] : memref<18x2x128xf32, #tpu.memory_space<vmem>>, vector<1x2x128xf32>
    %121 = vector.shape_cast %120 : vector<1x2x128xf32> to vector<2x128xf32>
    %122 = arith.mulf %96, %92 : vector<2x2x128xf32>
    %cst_88 = arith.constant dense<0.000000e+00> : vector<2x128xf32>
    %123 = vector.multi_reduction <add>, %122, %cst_88 [1] : vector<2x2x128xf32> to vector<2x128xf32>
    %124 = arith.addf %121, %123 : vector<2x128xf32>
    %c5_89 = arith.constant 5 : index
    %c0_90 = arith.constant 0 : index
    %c0_91 = arith.constant 0 : index
    %125 = vector.load %arg12[%c5_89, %c0_90, %c0_91] : memref<18x2x128xf32, #tpu.memory_space<vmem>>, vector<1x2x128xf32>
    %126 = vector.shape_cast %125 : vector<1x2x128xf32> to vector<2x128xf32>
    %127 = vector.shape_cast %124 : vector<2x128xf32> to vector<1x2x128xf32>
    tpu.vector_store %arg12[%c5_89, %c0_90, %c0_91], %127 {strides = array<i32>} : memref<18x2x128xf32, #tpu.memory_space<vmem>>, vector<1x2x128xf32>,
    %c0_92 = arith.constant 0 : index
    %c2_93 = arith.constant 2 : index
    %c0_94 = arith.constant 0 : index
    %c0_95 = arith.constant 0 : index
    %128 = vector.load %arg2[%c0_92, %c2_93, %c0_94, %c0_95] : memref<2x4x2x128xf32, #tpu.memory_space<vmem>>, vector<2x1x2x128xf32>
    %129 = vector.shape_cast %128 : vector<2x1x2x128xf32> to vector<2x2x128xf32>
    %c0_96 = arith.constant 0 : index
    %c1_97 = arith.constant 1 : index
    %c0_98 = arith.constant 0 : index
    %c0_99 = arith.constant 0 : index
    %130 = vector.load %arg5[%c0_96, %c1_97, %c0_98, %c0_99] : memref<2x3x2x128xf32, #tpu.memory_space<vmem>>, vector<2x1x2x128xf32>
    %131 = vector.shape_cast %130 : vector<2x1x2x128xf32> to vector<2x2x128xf32>
    %132 = arith.negf %129 : vector<2x2x128xf32>
    %133 = math.exp %132 : vector<2x2x128xf32>
    %cst_100 = arith.constant 1.000000e+00 : f32
    %134 = vector.broadcast %cst_100 : f32 to vector<2x2x128xf32>
    %135 = arith.addf %134, %133 : vector<2x2x128xf32>
    %136 = arith.divf %134, %135 : vector<2x2x128xf32>
    %c6 = arith.constant 6 : index
    %c0_101 = arith.constant 0 : index
    %c0_102 = arith.constant 0 : index
    %137 = vector.load %arg12[%c6, %c0_101, %c0_102] : memref<18x2x128xf32, #tpu.memory_space<vmem>>, vector<1x2x128xf32>
    %138 = vector.shape_cast %137 : vector<1x2x128xf32> to vector<2x128xf32>
    %139 = arith.mulf %136, %131 : vector<2x2x128xf32>
    %140 = arith.mulf %139, %92 : vector<2x2x128xf32>
    %cst_103 = arith.constant dense<0.000000e+00> : vector<2x128xf32>
    %141 = vector.multi_reduction <add>, %140, %cst_103 [1] : vector<2x2x128xf32> to vector<2x128xf32>
    %142 = arith.addf %138, %141 : vector<2x128xf32>
    %c6_104 = arith.constant 6 : index
    %c0_105 = arith.constant 0 : index
    %c0_106 = arith.constant 0 : index
    %143 = vector.load %arg12[%c6_104, %c0_105, %c0_106] : memref<18x2x128xf32, #tpu.memory_space<vmem>>, vector<1x2x128xf32>
    %144 = vector.shape_cast %143 : vector<1x2x128xf32> to vector<2x128xf32>
    %145 = vector.shape_cast %142 : vector<2x128xf32> to vector<1x2x128xf32>
    tpu.vector_store %arg12[%c6_104, %c0_105, %c0_106], %145 {strides = array<i32>} : memref<18x2x128xf32, #tpu.memory_space<vmem>>, vector<1x2x128xf32>,
    %c7 = arith.constant 7 : index
    %c0_107 = arith.constant 0 : index
    %c0_108 = arith.constant 0 : index
    %146 = vector.load %arg12[%c7, %c0_107, %c0_108] : memref<18x2x128xf32, #tpu.memory_space<vmem>>, vector<1x2x128xf32>
    %147 = vector.shape_cast %146 : vector<1x2x128xf32> to vector<2x128xf32>
    %148 = arith.mulf %136, %136 : vector<2x2x128xf32>
    %149 = arith.mulf %148, %92 : vector<2x2x128xf32>
    %cst_109 = arith.constant dense<0.000000e+00> : vector<2x128xf32>
    %150 = vector.multi_reduction <add>, %149, %cst_109 [1] : vector<2x2x128xf32> to vector<2x128xf32>
    %151 = arith.addf %147, %150 : vector<2x128xf32>
    %c7_110 = arith.constant 7 : index
    %c0_111 = arith.constant 0 : index
    %c0_112 = arith.constant 0 : index
    %152 = vector.load %arg12[%c7_110, %c0_111, %c0_112] : memref<18x2x128xf32, #tpu.memory_space<vmem>>, vector<1x2x128xf32>
    %153 = vector.shape_cast %152 : vector<1x2x128xf32> to vector<2x128xf32>
    %154 = vector.shape_cast %151 : vector<2x128xf32> to vector<1x2x128xf32>
    tpu.vector_store %arg12[%c7_110, %c0_111, %c0_112], %154 {strides = array<i32>} : memref<18x2x128xf32, #tpu.memory_space<vmem>>, vector<1x2x128xf32>,
    %c8 = arith.constant 8 : index
    %c0_113 = arith.constant 0 : index
    %c0_114 = arith.constant 0 : index
    %155 = vector.load %arg12[%c8, %c0_113, %c0_114] : memref<18x2x128xf32, #tpu.memory_space<vmem>>, vector<1x2x128xf32>
    %156 = vector.shape_cast %155 : vector<1x2x128xf32> to vector<2x128xf32>
    %157 = arith.mulf %131, %92 : vector<2x2x128xf32>
    %cst_115 = arith.constant dense<0.000000e+00> : vector<2x128xf32>
    %158 = vector.multi_reduction <add>, %157, %cst_115 [1] : vector<2x2x128xf32> to vector<2x128xf32>
    %159 = arith.addf %156, %158 : vector<2x128xf32>
    %c8_116 = arith.constant 8 : index
    %c0_117 = arith.constant 0 : index
    %c0_118 = arith.constant 0 : index
    %160 = vector.load %arg12[%c8_116, %c0_117, %c0_118] : memref<18x2x128xf32, #tpu.memory_space<vmem>>, vector<1x2x128xf32>
    %161 = vector.shape_cast %160 : vector<1x2x128xf32> to vector<2x128xf32>
    %162 = vector.shape_cast %159 : vector<2x128xf32> to vector<1x2x128xf32>
    tpu.vector_store %arg12[%c8_116, %c0_117, %c0_118], %162 {strides = array<i32>} : memref<18x2x128xf32, #tpu.memory_space<vmem>>, vector<1x2x128xf32>,
    %c0_119 = arith.constant 0 : index
    %c3_120 = arith.constant 3 : index
    %c0_121 = arith.constant 0 : index
    %c0_122 = arith.constant 0 : index
    %163 = vector.load %arg2[%c0_119, %c3_120, %c0_121, %c0_122] : memref<2x4x2x128xf32, #tpu.memory_space<vmem>>, vector<2x1x2x128xf32>
    %164 = vector.shape_cast %163 : vector<2x1x2x128xf32> to vector<2x2x128xf32>
    %c0_123 = arith.constant 0 : index
    %c2_124 = arith.constant 2 : index
    %c0_125 = arith.constant 0 : index
    %c0_126 = arith.constant 0 : index
    %165 = vector.load %arg5[%c0_123, %c2_124, %c0_125, %c0_126] : memref<2x3x2x128xf32, #tpu.memory_space<vmem>>, vector<2x1x2x128xf32>
    %166 = vector.shape_cast %165 : vector<2x1x2x128xf32> to vector<2x2x128xf32>
    %167 = arith.negf %164 : vector<2x2x128xf32>
    %168 = math.exp %167 : vector<2x2x128xf32>
    %cst_127 = arith.constant 1.000000e+00 : f32
    %169 = vector.broadcast %cst_127 : f32 to vector<2x2x128xf32>
    %170 = arith.addf %169, %168 : vector<2x2x128xf32>
    %171 = arith.divf %169, %170 : vector<2x2x128xf32>
    %c9 = arith.constant 9 : index
    %c0_128 = arith.constant 0 : index
    %c0_129 = arith.constant 0 : index
    %172 = vector.load %arg12[%c9, %c0_128, %c0_129] : memref<18x2x128xf32, #tpu.memory_space<vmem>>, vector<1x2x128xf32>
    %173 = vector.shape_cast %172 : vector<1x2x128xf32> to vector<2x128xf32>
    %174 = arith.mulf %171, %166 : vector<2x2x128xf32>
    %175 = arith.mulf %174, %92 : vector<2x2x128xf32>
    %cst_130 = arith.constant dense<0.000000e+00> : vector<2x128xf32>
    %176 = vector.multi_reduction <add>, %175, %cst_130 [1] : vector<2x2x128xf32> to vector<2x128xf32>
    %177 = arith.addf %173, %176 : vector<2x128xf32>
    %c9_131 = arith.constant 9 : index
    %c0_132 = arith.constant 0 : index
    %c0_133 = arith.constant 0 : index
    %178 = vector.load %arg12[%c9_131, %c0_132, %c0_133] : memref<18x2x128xf32, #tpu.memory_space<vmem>>, vector<1x2x128xf32>
    %179 = vector.shape_cast %178 : vector<1x2x128xf32> to vector<2x128xf32>
    %180 = vector.shape_cast %177 : vector<2x128xf32> to vector<1x2x128xf32>
    tpu.vector_store %arg12[%c9_131, %c0_132, %c0_133], %180 {strides = array<i32>} : memref<18x2x128xf32, #tpu.memory_space<vmem>>, vector<1x2x128xf32>,
    %c10 = arith.constant 10 : index
    %c0_134 = arith.constant 0 : index
    %c0_135 = arith.constant 0 : index
    %181 = vector.load %arg12[%c10, %c0_134, %c0_135] : memref<18x2x128xf32, #tpu.memory_space<vmem>>, vector<1x2x128xf32>
    %182 = vector.shape_cast %181 : vector<1x2x128xf32> to vector<2x128xf32>
    %183 = arith.mulf %171, %171 : vector<2x2x128xf32>
    %184 = arith.mulf %183, %92 : vector<2x2x128xf32>
    %cst_136 = arith.constant dense<0.000000e+00> : vector<2x128xf32>
    %185 = vector.multi_reduction <add>, %184, %cst_136 [1] : vector<2x2x128xf32> to vector<2x128xf32>
    %186 = arith.addf %182, %185 : vector<2x128xf32>
    %c10_137 = arith.constant 10 : index
    %c0_138 = arith.constant 0 : index
    %c0_139 = arith.constant 0 : index
    %187 = vector.load %arg12[%c10_137, %c0_138, %c0_139] : memref<18x2x128xf32, #tpu.memory_space<vmem>>, vector<1x2x128xf32>
    %188 = vector.shape_cast %187 : vector<1x2x128xf32> to vector<2x128xf32>
    %189 = vector.shape_cast %186 : vector<2x128xf32> to vector<1x2x128xf32>
    tpu.vector_store %arg12[%c10_137, %c0_138, %c0_139], %189 {strides = array<i32>} : memref<18x2x128xf32, #tpu.memory_space<vmem>>, vector<1x2x128xf32>,
    %c11 = arith.constant 11 : index
    %c0_140 = arith.constant 0 : index
    %c0_141 = arith.constant 0 : index
    %190 = vector.load %arg12[%c11, %c0_140, %c0_141] : memref<18x2x128xf32, #tpu.memory_space<vmem>>, vector<1x2x128xf32>
    %191 = vector.shape_cast %190 : vector<1x2x128xf32> to vector<2x128xf32>
    %192 = arith.mulf %166, %92 : vector<2x2x128xf32>
    %cst_142 = arith.constant dense<0.000000e+00> : vector<2x128xf32>
    %193 = vector.multi_reduction <add>, %192, %cst_142 [1] : vector<2x2x128xf32> to vector<2x128xf32>
    %194 = arith.addf %191, %193 : vector<2x128xf32>
    %c11_143 = arith.constant 11 : index
    %c0_144 = arith.constant 0 : index
    %c0_145 = arith.constant 0 : index
    %195 = vector.load %arg12[%c11_143, %c0_144, %c0_145] : memref<18x2x128xf32, #tpu.memory_space<vmem>>, vector<1x2x128xf32>
    %196 = vector.shape_cast %195 : vector<1x2x128xf32> to vector<2x128xf32>
    %197 = vector.shape_cast %194 : vector<2x128xf32> to vector<1x2x128xf32>
    tpu.vector_store %arg12[%c11_143, %c0_144, %c0_145], %197 {strides = array<i32>} : memref<18x2x128xf32, #tpu.memory_space<vmem>>, vector<1x2x128xf32>,
    %198 = arith.andi %12, %10 : vector<2x2x128xi1>
    %cst_146 = arith.constant 0.000000e+00 : f32
    %199 = vector.broadcast %cst_146 : f32 to vector<2x2x128xf32>
    %200 = arith.cmpf ogt, %164, %199 : vector<2x2x128xf32>
    %cst_147 = arith.constant 5.000000e-01 : f32
    %201 = vector.broadcast %cst_147 : f32 to vector<2x2x128xf32>
    %202 = arith.cmpf ogt, %166, %201 : vector<2x2x128xf32>
    %c15 = arith.constant 15 : index
    %c0_148 = arith.constant 0 : index
    %c0_149 = arith.constant 0 : index
    %203 = vector.load %arg12[%c15, %c0_148, %c0_149] : memref<18x2x128xf32, #tpu.memory_space<vmem>>, vector<1x2x128xf32>
    %204 = vector.shape_cast %203 : vector<1x2x128xf32> to vector<2x128xf32>
    %205 = arith.andi %200, %202 : vector<2x2x128xi1>
    %206 = arith.andi %205, %198 : vector<2x2x128xi1>
    %cst_150 = arith.constant 1.000000e+00 : f32
    %cst_151 = arith.constant 0.000000e+00 : f32
    %207 = vector.broadcast %cst_150 : f32 to vector<2x2x128xf32>
    %208 = vector.broadcast %cst_151 : f32 to vector<2x2x128xf32>
    %209 = arith.select %206, %207, %208 : vector<2x2x128xi1>, vector<2x2x128xf32>
    %cst_152 = arith.constant dense<0.000000e+00> : vector<2x128xf32>
    %210 = vector.multi_reduction <add>, %209, %cst_152 [1] : vector<2x2x128xf32> to vector<2x128xf32>
    %211 = arith.addf %204, %210 : vector<2x128xf32>
    %c15_153 = arith.constant 15 : index
    %c0_154 = arith.constant 0 : index
    %c0_155 = arith.constant 0 : index
    %212 = vector.load %arg12[%c15_153, %c0_154, %c0_155] : memref<18x2x128xf32, #tpu.memory_space<vmem>>, vector<1x2x128xf32>
    %213 = vector.shape_cast %212 : vector<1x2x128xf32> to vector<2x128xf32>
    %214 = vector.shape_cast %211 : vector<2x128xf32> to vector<1x2x128xf32>
    tpu.vector_store %arg12[%c15_153, %c0_154, %c0_155], %214 {strides = array<i32>} : memref<18x2x128xf32, #tpu.memory_space<vmem>>, vector<1x2x128xf32>,
    %c16 = arith.constant 16 : index
    %c0_156 = arith.constant 0 : index
    %c0_157 = arith.constant 0 : index
    %215 = vector.load %arg12[%c16, %c0_156, %c0_157] : memref<18x2x128xf32, #tpu.memory_space<vmem>>, vector<1x2x128xf32>
    %216 = vector.shape_cast %215 : vector<1x2x128xf32> to vector<2x128xf32>
    %217 = arith.ori %200, %202 : vector<2x2x128xi1>
    %218 = arith.andi %217, %198 : vector<2x2x128xi1>
    %cst_158 = arith.constant 1.000000e+00 : f32
    %cst_159 = arith.constant 0.000000e+00 : f32
    %219 = vector.broadcast %cst_158 : f32 to vector<2x2x128xf32>
    %220 = vector.broadcast %cst_159 : f32 to vector<2x2x128xf32>
    %221 = arith.select %218, %219, %220 : vector<2x2x128xi1>, vector<2x2x128xf32>
    %cst_160 = arith.constant dense<0.000000e+00> : vector<2x128xf32>
    %222 = vector.multi_reduction <add>, %221, %cst_160 [1] : vector<2x2x128xf32> to vector<2x128xf32>
    %223 = arith.addf %216, %222 : vector<2x128xf32>
    %c16_161 = arith.constant 16 : index
    %c0_162 = arith.constant 0 : index
    %c0_163 = arith.constant 0 : index
    %224 = vector.load %arg12[%c16_161, %c0_162, %c0_163] : memref<18x2x128xf32, #tpu.memory_space<vmem>>, vector<1x2x128xf32>
    %225 = vector.shape_cast %224 : vector<1x2x128xf32> to vector<2x128xf32>
    %226 = vector.shape_cast %223 : vector<2x128xf32> to vector<1x2x128xf32>
    tpu.vector_store %arg12[%c16_161, %c0_162, %c0_163], %226 {strides = array<i32>} : memref<18x2x128xf32, #tpu.memory_space<vmem>>, vector<1x2x128xf32>,
    %c17 = arith.constant 17 : index
    %c0_164 = arith.constant 0 : index
    %c0_165 = arith.constant 0 : index
    %227 = vector.load %arg12[%c17, %c0_164, %c0_165] : memref<18x2x128xf32, #tpu.memory_space<vmem>>, vector<1x2x128xf32>
    %228 = vector.shape_cast %227 : vector<1x2x128xf32> to vector<2x128xf32>
    %cst_166 = arith.constant 1.000000e+00 : f32
    %cst_167 = arith.constant 0.000000e+00 : f32
    %229 = vector.broadcast %cst_166 : f32 to vector<2x2x128xf32>
    %230 = vector.broadcast %cst_167 : f32 to vector<2x2x128xf32>
    %231 = arith.select %198, %229, %230 : vector<2x2x128xi1>, vector<2x2x128xf32>
    %cst_168 = arith.constant dense<0.000000e+00> : vector<2x128xf32>
    %232 = vector.multi_reduction <add>, %231, %cst_168 [1] : vector<2x2x128xf32> to vector<2x128xf32>
    %233 = arith.addf %228, %232 : vector<2x128xf32>
    %c17_169 = arith.constant 17 : index
    %c0_170 = arith.constant 0 : index
    %c0_171 = arith.constant 0 : index
    %234 = vector.load %arg12[%c17_169, %c0_170, %c0_171] : memref<18x2x128xf32, #tpu.memory_space<vmem>>, vector<1x2x128xf32>
    %235 = vector.shape_cast %234 : vector<1x2x128xf32> to vector<2x128xf32>
    %236 = vector.shape_cast %233 : vector<2x128xf32> to vector<1x2x128xf32>
    tpu.vector_store %arg12[%c17_169, %c0_170, %c0_171], %236 {strides = array<i32>} : memref<18x2x128xf32, #tpu.memory_space<vmem>>, vector<1x2x128xf32>,
    %c0_i32_172 = arith.constant 0 : i32
    %237 = arith.cmpi eq, %arg1, %c0_i32_172 : i32
    %238 = arith.extui %237 : i1 to i32
    %c0_i32_173 = arith.constant 0 : i32
    %239 = arith.cmpi ne, %238, %c0_i32_173 : i32
    scf.if %239 {
      %c0_174 = arith.constant 0 : index
      %c0_175 = arith.constant 0 : index
      %c0_176 = arith.constant 0 : index
      %240 = vector.load %arg12[%c0_174, %c0_175, %c0_176] : memref<18x2x128xf32, #tpu.memory_space<vmem>>, vector<1x2x128xf32>
      %241 = vector.shape_cast %240 : vector<1x2x128xf32> to vector<2x128xf32>
      %cst_177 = arith.constant dense<0.000000e+00> : vector<2xf32>
      %242 = vector.multi_reduction <add>, %241, %cst_177 [1] : vector<2x128xf32> to vector<2xf32>
      %243 = vector.shape_cast %242 : vector<2xf32> to vector<2x1xf32>
      %c1_178 = arith.constant 1 : index
      %c0_179 = arith.constant 0 : index
      %c0_180 = arith.constant 0 : index
      %244 = vector.load %arg12[%c1_178, %c0_179, %c0_180] : memref<18x2x128xf32, #tpu.memory_space<vmem>>, vector<1x2x128xf32>
      %245 = vector.shape_cast %244 : vector<1x2x128xf32> to vector<2x128xf32>
      %cst_181 = arith.constant dense<0.000000e+00> : vector<2xf32>
      %246 = vector.multi_reduction <add>, %245, %cst_181 [1] : vector<2x128xf32> to vector<2xf32>
      %247 = vector.shape_cast %246 : vector<2xf32> to vector<2x1xf32>
      %c2_182 = arith.constant 2 : index
      %c0_183 = arith.constant 0 : index
      %c0_184 = arith.constant 0 : index
      %248 = vector.load %arg12[%c2_182, %c0_183, %c0_184] : memref<18x2x128xf32, #tpu.memory_space<vmem>>, vector<1x2x128xf32>
      %249 = vector.shape_cast %248 : vector<1x2x128xf32> to vector<2x128xf32>
      %cst_185 = arith.constant dense<0.000000e+00> : vector<2xf32>
      %250 = vector.multi_reduction <add>, %249, %cst_185 [1] : vector<2x128xf32> to vector<2xf32>
      %251 = vector.shape_cast %250 : vector<2xf32> to vector<2x1xf32>
      %cst_186 = arith.constant 2.000000e+00 : f32
      %252 = vector.broadcast %cst_186 : f32 to vector<2x1xf32>
      %253 = arith.mulf %252, %243 : vector<2x1xf32>
      %254 = arith.addf %247, %251 : vector<2x1xf32>
      %cst_187 = arith.constant 2.000000e-03 : f32
      %255 = vector.broadcast %cst_187 : f32 to vector<2x1xf32>
      %256 = arith.addf %254, %255 : vector<2x1xf32>
      %257 = arith.divf %253, %256 : vector<2x1xf32>
      %cst_188 = arith.constant 1.000000e+00 : f32
      %258 = vector.broadcast %cst_188 : f32 to vector<2x1xf32>
      %259 = arith.subf %258, %257 : vector<2x1xf32>
      %cst_189 = arith.constant 0.699999988 : f32
      %260 = vector.broadcast %cst_189 : f32 to vector<2x1xf32>
      %261 = arith.mulf %260, %259 : vector<2x1xf32>
      %262 = vector.shape_cast %261 : vector<2x1xf32> to vector<2x1x1xf32>
      %c0_190 = arith.constant 0 : index
      %c0_191 = arith.constant 0 : index
      %c0_192 = arith.constant 0 : index
      %263 = vector.load %arg8[%c0_190, %c0_191, %c0_192] : memref<2x1x1xf32, #tpu.memory_space<vmem>>, vector<2x1x1xf32>
      tpu.vector_store %arg8[%c0_190, %c0_191, %c0_192], %262 {strides = array<i32>} : memref<2x1x1xf32, #tpu.memory_space<vmem>>, vector<2x1x1xf32>,
      %c12_193 = arith.constant 12 : index
      %c0_194 = arith.constant 0 : index
      %c0_195 = arith.constant 0 : index
      %264 = vector.load %arg12[%c12_193, %c0_194, %c0_195] : memref<18x2x128xf32, #tpu.memory_space<vmem>>, vector<1x2x128xf32>
      %265 = vector.shape_cast %264 : vector<1x2x128xf32> to vector<2x128xf32>
      %cst_196 = arith.constant dense<0.000000e+00> : vector<2xf32>
      %266 = vector.multi_reduction <add>, %265, %cst_196 [1] : vector<2x128xf32> to vector<2xf32>
      %267 = vector.shape_cast %266 : vector<2xf32> to vector<2x1xf32>
      %c13_197 = arith.constant 13 : index
      %c0_198 = arith.constant 0 : index
      %c0_199 = arith.constant 0 : index
      %268 = vector.load %arg12[%c13_197, %c0_198, %c0_199] : memref<18x2x128xf32, #tpu.memory_space<vmem>>, vector<1x2x128xf32>
      %269 = vector.shape_cast %268 : vector<1x2x128xf32> to vector<2x128xf32>
      %cst_200 = arith.constant dense<0.000000e+00> : vector<2xf32>
      %270 = vector.multi_reduction <add>, %269, %cst_200 [1] : vector<2x128xf32> to vector<2xf32>
      %271 = vector.shape_cast %270 : vector<2xf32> to vector<2x1xf32>
      %c14_201 = arith.constant 14 : index
      %c0_202 = arith.constant 0 : index
      %c0_203 = arith.constant 0 : index
      %272 = vector.load %arg12[%c14_201, %c0_202, %c0_203] : memref<18x2x128xf32, #tpu.memory_space<vmem>>, vector<1x2x128xf32>
      %273 = vector.shape_cast %272 : vector<1x2x128xf32> to vector<2x128xf32>
      %cst_204 = arith.constant dense<0.000000e+00> : vector<2xf32>
      %274 = vector.multi_reduction <add>, %273, %cst_204 [1] : vector<2x128xf32> to vector<2xf32>
      %275 = vector.shape_cast %274 : vector<2xf32> to vector<2x1xf32>
      %276 = arith.subf %275, %271 : vector<2x1xf32>
      %277 = arith.subf %275, %267 : vector<2x1xf32>
      %cst_205 = arith.constant 9.99999997E-7 : f32
      %278 = vector.broadcast %cst_205 : f32 to vector<2x1xf32>
      %279 = arith.addf %277, %278 : vector<2x1xf32>
      %280 = arith.divf %276, %279 : vector<2x1xf32>
      %cst_206 = arith.constant 9.99999997E-7 : f32
      %281 = vector.broadcast %cst_206 : f32 to vector<2x1xf32>
      %282 = arith.addf %271, %281 : vector<2x1xf32>
      %283 = arith.divf %267, %282 : vector<2x1xf32>
      %284 = arith.addf %280, %283 : vector<2x1xf32>
      %cst_207 = arith.constant 5.000000e-01 : f32
      %285 = vector.broadcast %cst_207 : f32 to vector<2x1xf32>
      %286 = arith.mulf %285, %284 : vector<2x1xf32>
      %287 = vector.shape_cast %286 : vector<2x1xf32> to vector<2x1x1xf32>
      %c0_208 = arith.constant 0 : index
      %c0_209 = arith.constant 0 : index
      %c0_210 = arith.constant 0 : index
      %288 = vector.load %arg9[%c0_208, %c0_209, %c0_210] : memref<2x1x1xf32, #tpu.memory_space<vmem>>, vector<2x1x1xf32>
      tpu.vector_store %arg9[%c0_208, %c0_209, %c0_210], %287 {strides = array<i32>} : memref<2x1x1xf32, #tpu.memory_space<vmem>>, vector<2x1x1xf32>,
      %cst_211 = arith.constant 0.000000e+00 : f32
      %289 = vector.broadcast %cst_211 : f32 to vector<2x1xf32>
      %c3_212 = arith.constant 3 : index
      %c0_213 = arith.constant 0 : index
      %c0_214 = arith.constant 0 : index
      %290 = vector.load %arg12[%c3_212, %c0_213, %c0_214] : memref<18x2x128xf32, #tpu.memory_space<vmem>>, vector<1x2x128xf32>
      %291 = vector.shape_cast %290 : vector<1x2x128xf32> to vector<2x128xf32>
      %cst_215 = arith.constant dense<0.000000e+00> : vector<2xf32>
      %292 = vector.multi_reduction <add>, %291, %cst_215 [1] : vector<2x128xf32> to vector<2xf32>
      %293 = vector.shape_cast %292 : vector<2xf32> to vector<2x1xf32>
      %c4_216 = arith.constant 4 : index
      %c0_217 = arith.constant 0 : index
      %c0_218 = arith.constant 0 : index
      %294 = vector.load %arg12[%c4_216, %c0_217, %c0_218] : memref<18x2x128xf32, #tpu.memory_space<vmem>>, vector<1x2x128xf32>
      %295 = vector.shape_cast %294 : vector<1x2x128xf32> to vector<2x128xf32>
      %cst_219 = arith.constant dense<0.000000e+00> : vector<2xf32>
      %296 = vector.multi_reduction <add>, %295, %cst_219 [1] : vector<2x128xf32> to vector<2xf32>
      %297 = vector.shape_cast %296 : vector<2xf32> to vector<2x1xf32>
      %c5_220 = arith.constant 5 : index
      %c0_221 = arith.constant 0 : index
      %c0_222 = arith.constant 0 : index
      %298 = vector.load %arg12[%c5_220, %c0_221, %c0_222] : memref<18x2x128xf32, #tpu.memory_space<vmem>>, vector<1x2x128xf32>
      %299 = vector.shape_cast %298 : vector<1x2x128xf32> to vector<2x128xf32>
      %cst_223 = arith.constant dense<0.000000e+00> : vector<2xf32>
      %300 = vector.multi_reduction <add>, %299, %cst_223 [1] : vector<2x128xf32> to vector<2xf32>
      %301 = vector.shape_cast %300 : vector<2xf32> to vector<2x1xf32>
      %cst_224 = arith.constant 2.000000e+00 : f32
      %302 = vector.broadcast %cst_224 : f32 to vector<2x1xf32>
      %303 = arith.mulf %302, %293 : vector<2x1xf32>
      %304 = arith.addf %297, %301 : vector<2x1xf32>
      %cst_225 = arith.constant 2.000000e-03 : f32
      %305 = vector.broadcast %cst_225 : f32 to vector<2x1xf32>
      %306 = arith.addf %304, %305 : vector<2x1xf32>
      %307 = arith.divf %303, %306 : vector<2x1xf32>
      %cst_226 = arith.constant 1.000000e+00 : f32
      %308 = vector.broadcast %cst_226 : f32 to vector<2x1xf32>
      %309 = arith.subf %308, %307 : vector<2x1xf32>
      %cst_227 = arith.constant 3.000000e-01 : f32
      %310 = vector.broadcast %cst_227 : f32 to vector<2x1xf32>
      %311 = arith.mulf %310, %309 : vector<2x1xf32>
      %312 = arith.addf %289, %311 : vector<2x1xf32>
      %c6_228 = arith.constant 6 : index
      %c0_229 = arith.constant 0 : index
      %c0_230 = arith.constant 0 : index
      %313 = vector.load %arg12[%c6_228, %c0_229, %c0_230] : memref<18x2x128xf32, #tpu.memory_space<vmem>>, vector<1x2x128xf32>
      %314 = vector.shape_cast %313 : vector<1x2x128xf32> to vector<2x128xf32>
      %cst_231 = arith.constant dense<0.000000e+00> : vector<2xf32>
      %315 = vector.multi_reduction <add>, %314, %cst_231 [1] : vector<2x128xf32> to vector<2xf32>
      %316 = vector.shape_cast %315 : vector<2xf32> to vector<2x1xf32>
      %c7_232 = arith.constant 7 : index
      %c0_233 = arith.constant 0 : index
      %c0_234 = arith.constant 0 : index
      %317 = vector.load %arg12[%c7_232, %c0_233, %c0_234] : memref<18x2x128xf32, #tpu.memory_space<vmem>>, vector<1x2x128xf32>
      %318 = vector.shape_cast %317 : vector<1x2x128xf32> to vector<2x128xf32>
      %cst_235 = arith.constant dense<0.000000e+00> : vector<2xf32>
      %319 = vector.multi_reduction <add>, %318, %cst_235 [1] : vector<2x128xf32> to vector<2xf32>
      %320 = vector.shape_cast %319 : vector<2xf32> to vector<2x1xf32>
      %c8_236 = arith.constant 8 : index
      %c0_237 = arith.constant 0 : index
      %c0_238 = arith.constant 0 : index
      %321 = vector.load %arg12[%c8_236, %c0_237, %c0_238] : memref<18x2x128xf32, #tpu.memory_space<vmem>>, vector<1x2x128xf32>
      %322 = vector.shape_cast %321 : vector<1x2x128xf32> to vector<2x128xf32>
      %cst_239 = arith.constant dense<0.000000e+00> : vector<2xf32>
      %323 = vector.multi_reduction <add>, %322, %cst_239 [1] : vector<2x128xf32> to vector<2xf32>
      %324 = vector.shape_cast %323 : vector<2xf32> to vector<2x1xf32>
      %cst_240 = arith.constant 2.000000e+00 : f32
      %325 = vector.broadcast %cst_240 : f32 to vector<2x1xf32>
      %326 = arith.mulf %325, %316 : vector<2x1xf32>
      %327 = arith.addf %320, %324 : vector<2x1xf32>
      %cst_241 = arith.constant 2.000000e-03 : f32
      %328 = vector.broadcast %cst_241 : f32 to vector<2x1xf32>
      %329 = arith.addf %327, %328 : vector<2x1xf32>
      %330 = arith.divf %326, %329 : vector<2x1xf32>
      %cst_242 = arith.constant 1.000000e+00 : f32
      %331 = vector.broadcast %cst_242 : f32 to vector<2x1xf32>
      %332 = arith.subf %331, %330 : vector<2x1xf32>
      %cst_243 = arith.constant 3.000000e-01 : f32
      %333 = vector.broadcast %cst_243 : f32 to vector<2x1xf32>
      %334 = arith.mulf %333, %332 : vector<2x1xf32>
      %335 = arith.addf %312, %334 : vector<2x1xf32>
      %c9_244 = arith.constant 9 : index
      %c0_245 = arith.constant 0 : index
      %c0_246 = arith.constant 0 : index
      %336 = vector.load %arg12[%c9_244, %c0_245, %c0_246] : memref<18x2x128xf32, #tpu.memory_space<vmem>>, vector<1x2x128xf32>
      %337 = vector.shape_cast %336 : vector<1x2x128xf32> to vector<2x128xf32>
      %cst_247 = arith.constant dense<0.000000e+00> : vector<2xf32>
      %338 = vector.multi_reduction <add>, %337, %cst_247 [1] : vector<2x128xf32> to vector<2xf32>
      %339 = vector.shape_cast %338 : vector<2xf32> to vector<2x1xf32>
      %c10_248 = arith.constant 10 : index
      %c0_249 = arith.constant 0 : index
      %c0_250 = arith.constant 0 : index
      %340 = vector.load %arg12[%c10_248, %c0_249, %c0_250] : memref<18x2x128xf32, #tpu.memory_space<vmem>>, vector<1x2x128xf32>
      %341 = vector.shape_cast %340 : vector<1x2x128xf32> to vector<2x128xf32>
      %cst_251 = arith.constant dense<0.000000e+00> : vector<2xf32>
      %342 = vector.multi_reduction <add>, %341, %cst_251 [1] : vector<2x128xf32> to vector<2xf32>
      %343 = vector.shape_cast %342 : vector<2xf32> to vector<2x1xf32>
      %c11_252 = arith.constant 11 : index
      %c0_253 = arith.constant 0 : index
      %c0_254 = arith.constant 0 : index
      %344 = vector.load %arg12[%c11_252, %c0_253, %c0_254] : memref<18x2x128xf32, #tpu.memory_space<vmem>>, vector<1x2x128xf32>
      %345 = vector.shape_cast %344 : vector<1x2x128xf32> to vector<2x128xf32>
      %cst_255 = arith.constant dense<0.000000e+00> : vector<2xf32>
      %346 = vector.multi_reduction <add>, %345, %cst_255 [1] : vector<2x128xf32> to vector<2xf32>
      %347 = vector.shape_cast %346 : vector<2xf32> to vector<2x1xf32>
      %cst_256 = arith.constant 2.000000e+00 : f32
      %348 = vector.broadcast %cst_256 : f32 to vector<2x1xf32>
      %349 = arith.mulf %348, %339 : vector<2x1xf32>
      %350 = arith.addf %343, %347 : vector<2x1xf32>
      %cst_257 = arith.constant 2.000000e-03 : f32
      %351 = vector.broadcast %cst_257 : f32 to vector<2x1xf32>
      %352 = arith.addf %350, %351 : vector<2x1xf32>
      %353 = arith.divf %349, %352 : vector<2x1xf32>
      %cst_258 = arith.constant 1.000000e+00 : f32
      %354 = vector.broadcast %cst_258 : f32 to vector<2x1xf32>
      %355 = arith.subf %354, %353 : vector<2x1xf32>
      %cst_259 = arith.constant 3.000000e-01 : f32
      %356 = vector.broadcast %cst_259 : f32 to vector<2x1xf32>
      %357 = arith.mulf %356, %355 : vector<2x1xf32>
      %358 = arith.addf %335, %357 : vector<2x1xf32>
      %cst_260 = arith.constant 3.000000e+00 : f32
      %359 = vector.broadcast %cst_260 : f32 to vector<2x1xf32>
      %360 = arith.divf %358, %359 : vector<2x1xf32>
      %361 = vector.shape_cast %360 : vector<2x1xf32> to vector<2x1x1xf32>
      %c0_261 = arith.constant 0 : index
      %c0_262 = arith.constant 0 : index
      %c0_263 = arith.constant 0 : index
      %362 = vector.load %arg10[%c0_261, %c0_262, %c0_263] : memref<2x1x1xf32, #tpu.memory_space<vmem>>, vector<2x1x1xf32>
      tpu.vector_store %arg10[%c0_261, %c0_262, %c0_263], %361 {strides = array<i32>} : memref<2x1x1xf32, #tpu.memory_space<vmem>>, vector<2x1x1xf32>,
      %c15_264 = arith.constant 15 : index
      %c0_265 = arith.constant 0 : index
      %c0_266 = arith.constant 0 : index
      %363 = vector.load %arg12[%c15_264, %c0_265, %c0_266] : memref<18x2x128xf32, #tpu.memory_space<vmem>>, vector<1x2x128xf32>
      %364 = vector.shape_cast %363 : vector<1x2x128xf32> to vector<2x128xf32>
      %cst_267 = arith.constant dense<0.000000e+00> : vector<2xf32>
      %365 = vector.multi_reduction <add>, %364, %cst_267 [1] : vector<2x128xf32> to vector<2xf32>
      %366 = vector.shape_cast %365 : vector<2xf32> to vector<2x1xf32>
      %c16_268 = arith.constant 16 : index
      %c0_269 = arith.constant 0 : index
      %c0_270 = arith.constant 0 : index
      %367 = vector.load %arg12[%c16_268, %c0_269, %c0_270] : memref<18x2x128xf32, #tpu.memory_space<vmem>>, vector<1x2x128xf32>
      %368 = vector.shape_cast %367 : vector<1x2x128xf32> to vector<2x128xf32>
      %cst_271 = arith.constant dense<0.000000e+00> : vector<2xf32>
      %369 = vector.multi_reduction <add>, %368, %cst_271 [1] : vector<2x128xf32> to vector<2xf32>
      %370 = vector.shape_cast %369 : vector<2xf32> to vector<2x1xf32>
      %c17_272 = arith.constant 17 : index
      %c0_273 = arith.constant 0 : index
      %c0_274 = arith.constant 0 : index
      %371 = vector.load %arg12[%c17_272, %c0_273, %c0_274] : memref<18x2x128xf32, #tpu.memory_space<vmem>>, vector<1x2x128xf32>
      %372 = vector.shape_cast %371 : vector<1x2x128xf32> to vector<2x128xf32>
      %cst_275 = arith.constant dense<0.000000e+00> : vector<2xf32>
      %373 = vector.multi_reduction <add>, %372, %cst_275 [1] : vector<2x128xf32> to vector<2xf32>
      %374 = vector.shape_cast %373 : vector<2xf32> to vector<2x1xf32>
      %375 = arith.subf %374, %370 : vector<2x1xf32>
      %376 = arith.subf %374, %366 : vector<2x1xf32>
      %cst_276 = arith.constant 9.99999997E-7 : f32
      %377 = vector.broadcast %cst_276 : f32 to vector<2x1xf32>
      %378 = arith.addf %376, %377 : vector<2x1xf32>
      %379 = arith.divf %375, %378 : vector<2x1xf32>
      %cst_277 = arith.constant 9.99999997E-7 : f32
      %380 = vector.broadcast %cst_277 : f32 to vector<2x1xf32>
      %381 = arith.addf %370, %380 : vector<2x1xf32>
      %382 = arith.divf %366, %381 : vector<2x1xf32>
      %383 = arith.addf %379, %382 : vector<2x1xf32>
      %cst_278 = arith.constant 5.000000e-01 : f32
      %384 = vector.broadcast %cst_278 : f32 to vector<2x1xf32>
      %385 = arith.mulf %384, %383 : vector<2x1xf32>
      %386 = vector.shape_cast %385 : vector<2x1xf32> to vector<2x1x1xf32>
      %c0_279 = arith.constant 0 : index
      %c0_280 = arith.constant 0 : index
      %c0_281 = arith.constant 0 : index
      %387 = vector.load %arg11[%c0_279, %c0_280, %c0_281] : memref<2x1x1xf32, #tpu.memory_space<vmem>>, vector<2x1x1xf32>
      tpu.vector_store %arg11[%c0_279, %c0_280, %c0_281], %386 {strides = array<i32>} : memref<2x1x1xf32, #tpu.memory_space<vmem>>, vector<2x1x1xf32>,
    } else {
    }
    return
  }
  func.func @transform_0(%arg0: i32, %arg1: i32) -> (i32, i32, i32, i32) {
    %c0_i32 = arith.constant 0 : i32
    %c0_i32_0 = arith.constant 0 : i32
    %c0_i32_1 = arith.constant 0 : i32
    return %arg0, %c0_i32, %arg1, %c0_i32_0 : i32, i32, i32, i32
  }
  func.func @transform_1(%arg0: i32, %arg1: i32) -> (i32, i32, i32) {
    %c0_i32 = arith.constant 0 : i32
    %c0_i32_0 = arith.constant 0 : i32
    return %arg0, %arg1, %c0_i32 : i32, i32, i32
  }
  func.func @transform_2(%arg0: i32, %arg1: i32) -> (i32, i32, i32) {
    %c0_i32 = arith.constant 0 : i32
    %c0_i32_0 = arith.constant 0 : i32
    return %arg0, %arg1, %c0_i32 : i32, i32, i32
  }
  func.func @transform_3(%arg0: i32, %arg1: i32) -> (i32, i32, i32, i32) {
    %c0_i32 = arith.constant 0 : i32
    %c0_i32_0 = arith.constant 0 : i32
    %c0_i32_1 = arith.constant 0 : i32
    return %arg0, %c0_i32, %arg1, %c0_i32_0 : i32, i32, i32, i32
  }
  func.func @transform_4(%arg0: i32, %arg1: i32) -> (i32, i32, i32) {
    %c0_i32 = arith.constant 0 : i32
    %c0_i32_0 = arith.constant 0 : i32
    %c0_i32_1 = arith.constant 0 : i32
    return %arg0, %c0_i32, %c0_i32_0 : i32, i32, i32
  }
  func.func @transform_5(%arg0: i32, %arg1: i32) -> (i32, i32, i32) {
    %c0_i32 = arith.constant 0 : i32
    %c0_i32_0 = arith.constant 0 : i32
    %c0_i32_1 = arith.constant 0 : i32
    return %arg0, %c0_i32, %c0_i32_0 : i32, i32, i32
  }
  func.func @transform_6(%arg0: i32, %arg1: i32) -> (i32, i32, i32) {
    %c0_i32 = arith.constant 0 : i32
    %c0_i32_0 = arith.constant 0 : i32
    %c0_i32_1 = arith.constant 0 : i32
    return %arg0, %c0_i32, %c0_i32_0 : i32, i32, i32
  }
  func.func @transform_7(%arg0: i32, %arg1: i32) -> (i32, i32, i32) {
    %c0_i32 = arith.constant 0 : i32
    %c0_i32_0 = arith.constant 0 : i32
    %c0_i32_1 = arith.constant 0 : i32
    return %arg0, %c0_i32, %c0_i32_0 : i32, i32, i32
  }
  func.func @transform_8(%arg0: i32, %arg1: i32) -> (i32, i32, i32) {
    %c0_i32 = arith.constant 0 : i32
    %c0_i32_0 = arith.constant 0 : i32
    %c0_i32_1 = arith.constant 0 : i32
    return %arg0, %c0_i32, %c0_i32_0 : i32, i32, i32
  }
  func.func @transform_9(%arg0: i32, %arg1: i32) -> (i32, i32, i32) {
    %c0_i32 = arith.constant 0 : i32
    %c0_i32_0 = arith.constant 0 : i32
    %c0_i32_1 = arith.constant 0 : i32
    return %arg0, %c0_i32, %c0_i32_0 : i32, i32, i32
  }
}

</mosaic_0001>

<bundles_post_ra>
// kernel: custom-call
= control target key start
LH: loop header
LB: loop body
LE: loop exit
PB: predicated region body
PF: predicated region fallthrough
CT: control target
= control target key end

     0   :  { %s6_s0 = inlined_call_operand.vmem [shape: u32[2], index: 0, kind: output, shape index: {}]  }

// kernel: psenet_loss.1
= control target key start
LH: loop header
LB: loop body
LE: loop exit
PB: predicated region body
PF: predicated region fallthrough
CT: control target
= control target key end

     0   :  { %v93_v0 = vlaneseq  ;;  %v920_v1 = vmov 0   ;;  %v921_v5 = vmov 0.0   ;;  %vm128_vm2 = vcmask 1041408   ;;  %s1404_s4 = inlined_call_operand.vmem [shape: f32[2,1,1], index: 4, kind: input, shape index: {}]   ;;  %s1405_s5 = inlined_call_operand.vmem [shape: f32[2,1,1], index: 5, kind: input, shape index: {}]   ;;  %s1406_s1 = inlined_call_operand.vmem [shape: f32[2,2,128], index: 1, kind: input, shape index: {}]   ;;  %s1407_s2 = inlined_call_operand.vmem [shape: f32[2,2,128], index: 2, kind: input, shape index: {}]   ;;  %s1408_s3 = inlined_call_operand.vmem [shape: f32[2,3,2,128], index: 3, kind: input, shape index: {}]   ;;  %s1409_s0 = inlined_call_operand.vmem [shape: f32[2,4,2,128], index: 0, kind: input, shape index: {}]   ;;  %s1410_s6 = inlined_call_operand.vmem [shape: f32[2,1,1], index: 6, kind: output, shape index: {0}]   ;;  %s1411_s9 = inlined_call_operand.vmem [shape: f32[2,1,1], index: 9, kind: output, shape index: {3}]   ;;  %s1412_s7 = inlined_call_operand.vmem [shape: f32[2,1,1], index: 7, kind: output, shape index: {1}]   ;;  %s1413_s8 = inlined_call_operand.vmem [shape: f32[2,1,1], index: 8, kind: output, shape index: {2}]  }
   0x1   :  { %870 = vset.pattern.permute.xlu0 %v920_v1  ;;  %v848_v2 = vld [vmem:[%s1404_s4] ss:$0 sm:$0xff]  ;;  %v849_v3 = vld [vmem:[%s1404_s4 + $0x1] ss:$0 sm:$0xff]  ;;  %871 = vset.pattern.permute.xlu1 %v920_v1  ;;  %39 = vst [vmem:[#allocation2 + $0x10] sm:$0x3] %v921_v5 }
   0x2   :  { %v57_v4 = vld [vmem:[%s1405_s5] sm:$0x1]  ;;  %31 = vst [vmem:[#allocation2] sm:$0x3] %v921_v5  ;;  %32 = vst [vmem:[#allocation2 + $0x2] sm:$0x3] %v921_v5  ;;  %74 = vperm.xlu0 %870, %v848_v2  }
   0x3   :  { %33 = vst [vmem:[#allocation2 + $0x4] sm:$0x3] %v921_v5  ;;  %34 = vst [vmem:[#allocation2 + $0x6] sm:$0x3] %v921_v5  ;;  %v58_v6 = vld [vmem:[%s1405_s5 + $0x1] sm:$0x1] }
   0x4   :  { %35 = vst [vmem:[#allocation2 + $0x8] sm:$0x3] %v921_v5  ;;  %36 = vst [vmem:[#allocation2 + $0xa] sm:$0x3] %v921_v5  ;;  %vm89_vm0 = vcmp.gt.f32.partialorder %v57_v4, 0.5  ;;  %v1002_v7 = vshrl.u32 %v93_v0, 7 }
   0x5   :  { %37 = vst [vmem:[#allocation2 + $0xc] sm:$0x3] %v921_v5  ;;  %38 = vst [vmem:[#allocation2 + $0xe] sm:$0x3] %v921_v5  ;;  %v1007_v8 = vld [vmem:[%s1406_s1] sm:$0x3] }
   0x6   :  { %40 = vst [vmem:[#allocation2 + $0x12] sm:$0x3] %v921_v5  ;;  %41 = vst [vmem:[#allocation2 + $0x14] sm:$0x3] %v921_v5  ;;  %v91_v9 = vsel %vm89_vm0, 1, %v920_v1  ;;  %vm90_vm1 = vcmp.gt.f32.partialorder %v58_v6, 0.5  ;;  %78 = vperm.xlu0 %870, %v849_v3  }
   0x7   :  { %42 = vst [vmem:[#allocation2 + $0x16] sm:$0x3] %v921_v5  ;;  %43 = vst [vmem:[#allocation2 + $0x18] sm:$0x3] %v921_v5  ;;  %v1012_v10 = vld [vmem:[%s1406_s1 + $0x2] sm:$0x3] }
   0x8   :  { %44 = vst [vmem:[#allocation2 + $0x1a] sm:$0x3] %v921_v5  ;;  %45 = vst [vmem:[#allocation2 + $0x1c] sm:$0x3] %v921_v5  ;;  %v1017_v11 = vld [vmem:[%s1407_s2] sm:$0x3] }
   0x9   :  { %46 = vst [vmem:[#allocation2 + $0x1e] sm:$0x3] %v921_v5  ;;  %47 = vst [vmem:[#allocation2 + $0x20] sm:$0x3] %v921_v5  ;;  %v1020_v12 = vsub.s32 0, %v1002_v7  ;;  %v1029_v14 = vmul.f32 %v1017_v11, %v1007_v8  ;;  %v92_v15 = vsel %vm90_vm1, 1, %v920_v1 }
   0xa   :  { %48 = vst [vmem:[#allocation2 + $0x22] sm:$0x3] %v921_v5  ;;  %v1025_v13 = vld [vmem:[%s1407_s2 + $0x2] sm:$0x3]  ;;  %v1043_v18 = vld [vmem:[%s1408_s3 + $0x8] sm:$0x3] }
   0xb   :  { %v1033_v16 = vmul.f32 %v1025_v13, %v1012_v10  ;;  %v1038_v17 = vld [vmem:[%s1408_s3 + $0x2] sm:$0x3]  ;;  %v96_v19 = vrot.slane %v91_v9, %v1020_v12  ;;  %v1051_v21 = vld [vmem:[%s1409_s0] sm:$0x3]  ;;  %vm59_vm3 = vcmp.gt.f32.partialorder %v1007_v8, 0.5  ;;  %vm61_vm4 = vcmp.gt.f32.partialorder %v1017_v11, 0.5 }
   0xc   :  { %v449_v20 = vmul.f32 %v1038_v17, %v1029_v14  ;;  %vm200_vm5 = vcmp.gt.f32.partialorder %v1051_v21, 0.0  ;;  %v852_v23 = vld [vmem:[%s1409_s0 + $0x2] sm:$0x3]  ;;  %v100_v24 = vrot.slane %v92_v15, %v1020_v12  ;;  %v260_v26 = vsel %vm61_vm4, 1.0, %v921_v5  ;;  %v853_v27 = vld [vmem:[%s1409_s0 + $0xa] sm:$0x3]  ;;  %vm1112_vm11 = vmand %vm61_vm4, %vm59_vm3 }
   0xd   :  { %v450_v22 = vmul.f32 %v1043_v18, %v1033_v16  ;;  %102 = vperm.xlu1 %871, %v96_v19   ;;  %vm204_vm6 = vmand %vm200_vm5, %vm59_vm3  ;;  %v262_v30 = vsel %vm128_vm2, %v260_v26, 0.0  ;;  %v854_v33 = vmul.f32 -1.442695, %v852_v23  ;;  %v855_v36 = vmul.f32 -1.442695, %v853_v27 }
   0xe   :  { %v451_v25 = vsel %vm128_vm2, %v449_v20, 0.0  ;;  %vm206_vm7 = vmand %vm204_vm6, %vm61_vm4  ;;  %v263_v39 = vrot.slane %v262_v30, 4  ;;  %v862_v43 = vld [vmem:[%s1409_s0 + $0x6] sm:$0x3]  ;;  %v1089_v46 = vld [vmem:[%s1408_s3 + $0x4] sm:$0x3] }
   0xf   :  { %v452_v28 = vrot.slane %v451_v25, 4  ;;  %v458_v29 = vsel %vm128_vm2, %v450_v22, 0.0  ;;  %v208_v32 = vsel %vm206_vm7, 1.0, %v921_v5  ;;  %vm232_vm8 = vmor %vm200_vm5, %vm59_vm3  ;;  %872 = vpow2.f32 %v854_v33  ;;  %v1094_v47 = vld [vmem:[%s1408_s3 + $0xa] sm:$0x3] }
  0x10   :  { %v459_v31 = vrot.slane %v458_v29, 4  ;;  %v210_v35 = vsel %vm128_vm2, %v208_v32, 0.0  ;;  %vm234_vm9 = vmand %vm232_vm8, %vm61_vm4  ;;  %874 = vpow2.f32 %v855_v36  ;;  %v856_v49 = vld [vmem:[%s1409_s0 + $0x4] sm:$0x3]  ;;  %v264_v51 = vadd.f32 %v263_v39, %v262_v30  ;;  %v857_v53 = vld [vmem:[%s1409_s0 + $0xc] sm:$0x3] }
  0x11   :  { %v453_v34 = vadd.f32 %v452_v28, %v451_v25  ;;  %105 = vperm.xlu1 %871, %v100_v24   ;;  %v236_v38 = vsel %vm234_vm9, 1.0, %v921_v5  ;;  %v211_v41 = vrot.slane %v210_v35, 4  ;;  %v866_v54 = vmul.f32 -1.442695, %v862_v43  ;;  %v448_v0 = vld [vmem:[#allocation2 + $0x10] sm:$0x3] }
  0x12   :  { %v460_v37 = vadd.f32 %v459_v31, %v458_v29  ;;  %v238_v42 = vsel %vm128_vm2, %v236_v38, 0.0  ;;  %v543_v55 = vmul.f32 %v1089_v46, %v1029_v14  ;;  %v544_v56 = vmul.f32 %v1094_v47, %v1033_v16  ;;  %v1124_v27 = vld [vmem:[%s1409_s0 + $0x8] sm:$0x3] }
  0x13   :  { %v454_v40 = vrot.slane %v453_v34, 2  ;;  %v239_v45 = vrot.slane %v238_v42, 4  ;;  %v212_v58 = vadd.f32 %v211_v41, %v210_v35  ;;  %v860_v60 = vmul.f32 -1.442695, %v856_v49 }
  0x14   :  { %v461_v44 = vrot.slane %v460_v37, 2  ;;  %vm145_vm10 = vcmask 1041409   ;;  %v545_v62 = vsel %vm128_vm2, %v543_v55, 0.0  ;;  %v552_v63 = vsel %vm128_vm2, %v544_v56, 0.0 }
  0x15   :  { %v455_v48 = vadd.f32 %v454_v40, %v453_v34  ;;  %v240_v59 = vadd.f32 %v239_v45, %v238_v42  ;;  %v861_v2 = vmul.f32 -1.442695, %v857_v53  ;;  %v265_v3 = vrot.slane %v264_v51, 2 }
  0x16   :  { %v462_v50 = vadd.f32 %v461_v44, %v460_v37  ;;  %876 = vpow2.f32 %v866_v54  ;;  %v546_v4 = vrot.slane %v545_v62, 4  ;;  %v553_v6 = vrot.slane %v552_v63, 4 }
  0x17   :  { %v456_v52 = vrot.slane %v455_v48, 1  ;;  %v213_v19 = vrot.slane %v212_v58, 2  ;;  %v241_v20 = vrot.slane %v240_v59, 2  ;;  %878 = vpow2.f32 %v860_v60 }
  0x18   :  { %v463_v57 = vrot.slane %v462_v50, 1  ;;  %v547_v24 = vadd.f32 %v546_v4, %v545_v62  ;;  %v554_v25 = vadd.f32 %v553_v6, %v552_v63  ;;  %vm567_vm12 = vcmp.gt.f32.partialorder %v862_v43, 0.0 }
  0x19   :  { %v457_v61 = vadd.f32 %v456_v52, %v455_v48  ;;  %v873_v22 = vpop.eup %872  ;;  %880 = vpow2.f32 %v861_v2  ;;  %vm569_vm13 = vcmp.gt.f32.partialorder %v1089_v46, 0.5  ;;  %v629_v26 = vsel %vm1112_vm11, 1.0, %v921_v5  ;;  %v542_v52 = vld [vmem:[#allocation2 + $0x16] sm:$0x3] }
  0x1a   :  { %v464_v1 = vadd.f32 %v463_v57, %v462_v50  ;;  %vm60_vm14 = vcmp.gt.f32.partialorder %v1012_v10, 0.5  ;;  %v875_v28 = vpop.eup %874  ;;  %v1127_v29 = vadd.f32 %v265_v3, %v264_v51  ;;  %v548_v30 = vrot.slane %v547_v24, 2  ;;  %vm573_vm15 = vmand %vm567_vm12, %vm569_vm13  ;;  %v863_v3 = vld [vmem:[%s1409_s0 + $0xe] sm:$0x3] }
  0x1b   :  { %v555_v31 = vrot.slane %v554_v25, 2  ;;  %v631_v32 = vsel %vm128_vm2, %v629_v26, 0.0  ;;  %v214_v33 = vadd.f32 %v213_v19, %v212_v58  ;;  %v1133_v34 = vadd.f32 %v241_v20, %v240_v59  ;;  %vm575_vm0 = vmand %vm573_vm15, %vm1112_vm11 }
  0x1c   :  { %v467_v15 = vsel %vm145_vm10, %v464_v1, %v457_v61  ;;  %v295_v35 = vadd.f32 1.0, %v873_v22  ;;  %v632_v36 = vrot.slane %v631_v32, 4  ;;  %v549_v37 = vadd.f32 %v548_v30, %v547_v24  ;;  %vm601_vm1 = vmor %vm567_vm12, %vm569_vm13 }
  0x1d   :  { %v469_v23 = vadd.f32 %v467_v15, %v448_v0  ;;  %v556_v38 = vadd.f32 %v555_v31, %v554_v25  ;;  %v577_v39 = vsel %vm575_vm0, 1.0, %v921_v5  ;;  %vm201_vm5 = vcmp.gt.f32.partialorder %v1124_v27, 0.0  ;;  %vm603_vm6 = vmand %vm601_vm1, %vm1112_vm11  ;;  %v287_v0 = vld [vmem:[%s1408_s3] sm:$0x3] }
  0x1e   :  { %v296_v40 = vadd.f32 1.0, %v875_v28  ;;  %v579_v41 = vsel %vm128_vm2, %v577_v39, 0.0  ;;  %v633_v42 = vadd.f32 %v632_v36, %v631_v32  ;;  %vm62_vm7 = vcmp.gt.f32.partialorder %v1025_v13, 0.5  ;;  %vm205_vm8 = vmand %vm201_vm5, %vm60_vm14 }
  0x1f   :  { %470 = vst [vmem:[#allocation2 + $0x10] sm:$0x3] %v469_v23  ;;  %v550_v44 = vrot.slane %v549_v37, 1  ;;  %v557_v45 = vrot.slane %v556_v38, 1  ;;  %v580_v48 = vrot.slane %v579_v41, 4  ;;  %v605_v49 = vsel %vm603_vm6, 1.0, %v921_v5  ;;  %vm207_vm9 = vmand %vm205_vm8, %vm62_vm7 }
  0x20   :  { %882 = vrcp.f32 %v295_v35  ;;  %v607_v43 = vsel %vm128_vm2, %v605_v49, 0.0  ;;  %v634_v50 = vrot.slane %v633_v42, 2  ;;  %v877_v51 = vpop.eup %876  ;;  %vm233_vm11 = vmor %vm201_vm5, %vm60_vm14  ;;  %v215_v59 = vrot.slane %v214_v33, 1 }
  0x21   :  { %v551_v53 = vadd.f32 %v550_v44, %v549_v37  ;;  %v558_v54 = vadd.f32 %v557_v45, %v556_v38  ;;  %v581_v55 = vadd.f32 %v580_v48, %v579_v41  ;;  %v608_v56 = vrot.slane %v607_v43, 4  ;;  %v879_v57 = vpop.eup %878  ;;  %vm235_vm12 = vmand %vm233_vm11, %vm62_vm7 }
  0x22   :  { %v267_v60 = vrot.slane %v1127_v29, 1  ;;  %v483_v61 = vadd.f32 1.0, %v877_v51  ;;  %v209_v62 = vsel %vm207_vm9, 1.0, %v921_v5  ;;  %v243_v63 = vrot.slane %v1133_v34, 1  ;;  %vm1193_vm13 = vmand %vm62_vm7, %vm60_vm14 }
  0x23   :  { %884 = vrcp.f32 %v296_v40  ;;  %v561_v1 = vsel %vm145_vm10, %v558_v54, %v551_v53  ;;  %v635_v2 = vadd.f32 %v634_v50, %v633_v42  ;;  %v881_v4 = vpop.eup %880  ;;  %v217_v15 = vsel %vm128_vm2, %v209_v62, 0.0 }
  0x24   :  { %886 = vrcp.f32 %v483_v61  ;;  %v563_v9 = vadd.f32 %v561_v1, %v542_v52  ;;  %v389_v19 = vadd.f32 1.0, %v879_v57  ;;  %v582_v20 = vrot.slane %v581_v55, 2 }
  0x25   :  { %v609_v22 = vadd.f32 %v608_v56, %v607_v43  ;;  %v218_v23 = vrot.slane %v217_v15, 4  ;;  %v237_v24 = vsel %vm235_vm12, 1.0, %v921_v5  ;;  %v261_v25 = vsel %vm62_vm7, 1.0, %v921_v5 }
  0x26   :  { %v750_v58 = vld [vmem:[#allocation2 + $0x10] sm:$0x3]  ;;  %564 = vst [vmem:[#allocation2 + $0x16] sm:$0x3] %v563_v9  ;;  %v867_v26 = vmul.f32 -1.442695, %v863_v3  ;;  %v1177_v28 = vmul.f32 %v287_v0, %v1029_v14  ;;  %v216_v30 = vadd.f32 %v215_v59, %v214_v33  ;;  %v1180_v31 = vadd.f32 %v267_v60, %v1127_v29 }
  0x27   :  { %v751_v6 = vsel %vm128_vm2, %v750_v58, 0.0  ;;  %v390_v32 = vadd.f32 1.0, %v881_v4  ;;  %v636_v35 = vrot.slane %v635_v2, 1  ;;  %v219_v36 = vadd.f32 %v218_v23, %v217_v15  ;;  %v288_v60 = vld [vmem:[%s1408_s3 + $0x6] sm:$0x3] }
  0x28   :  { %752 = vadd.xlane.f32.xlu0 %v751_v6  ;;  %v245_v37 = vsel %vm128_vm2, %v237_v24, 0.0  ;;  %v269_v38 = vsel %vm128_vm2, %v261_v25, 0.0  ;;  %888 = vpow2.f32 %v867_v26  ;;  %v1185_v39 = vadd.f32 %v243_v63, %v1133_v34 }
  0x29   :  { %890 = vrcp.f32 %v389_v19  ;;  %v1187_v40 = vadd.f32 %v582_v20, %v581_v55  ;;  %v610_v41 = vrot.slane %v609_v22, 2  ;;  %v220_v42 = vrot.slane %v219_v36, 2 }
  0x2a   :  { %v883_v33 = vpop.eup %882  ;;  %v246_v44 = vrot.slane %v245_v37, 4  ;;  %v270_v45 = vrot.slane %v269_v38, 4  ;;  %vm568_vm15 = vcmp.gt.f32.partialorder %v863_v3, 0.0  ;;  %892 = vrcp.f32 %v390_v32  ;;  %v203_v3 = vld [vmem:[#allocation2 + $0x18] sm:$0x3] }
  0x2b   :  { %v1197_v48 = vmul.f32 %v883_v33, %v287_v0  ;;  %v1199_v34 = vadd.f32 %v636_v35, %v635_v2  ;;  %vm570_vm0 = vcmp.gt.f32.partialorder %v1094_v47, 0.5  ;;  %v221_v49 = vadd.f32 %v220_v42, %v219_v36 }
  0x2c   :  { %v247_v43 = vadd.f32 %v246_v44, %v245_v37  ;;  %v271_v50 = vadd.f32 %v270_v45, %v269_v38  ;;  %vm1205_vm1 = vmand %vm568_vm15, %vm570_vm0  ;;  %v630_v52 = vsel %vm1193_vm13, 1.0, %v921_v5  ;;  %v1212_v54 = vmul.f32 %v883_v33, %v883_v33 }
  0x2d   :  { %v885_v53 = vpop.eup %884  ;;  %v584_v55 = vrot.slane %v1187_v40, 1  ;;  %v1215_v56 = vadd.f32 %v610_v41, %v609_v22  ;;  %v770_v57 = vld [vmem:[#allocation2 + $0x16] sm:$0x3]  ;;  %vm576_vm5 = vmand %vm1205_vm1, %vm1193_vm13  ;;  %v638_v58 = vsel %vm128_vm2, %v630_v52, 0.0  ;;  %v222_v62 = vrot.slane %v221_v49, 1 }
  0x2e   :  { %v887_v59 = vpop.eup %886  ;;  %v771_v61 = vsel %vm128_vm2, %v770_v57, 0.0  ;;  %v248_v63 = vrot.slane %v247_v43, 2  ;;  %v272_v0 = vrot.slane %v271_v50, 2  ;;  %vm1229_vm6 = vmor %vm568_vm15, %vm570_vm0  ;;  %v1233_v2 = vmul.f32 %v885_v53, %v288_v60 }
  0x2f   :  { %v491_v4 = vmul.f32 %v887_v59, %v1089_v46  ;;  %v517_v6 = vmul.f32 %v887_v59, %v887_v59  ;;  %772 = vadd.xlane.f32.xlu0 %v771_v61  ;;  %v578_v9 = vsel %vm576_vm5, 1.0, %v921_v5  ;;  %vm604_vm8 = vmand %vm1229_vm6, %vm1193_vm13  ;;  %v1241_v15 = vmul.f32 %v885_v53, %v885_v53 }
  0x30   :  { %v223_v19 = vadd.f32 %v222_v62, %v221_v49  ;;  %v249_v20 = vadd.f32 %v248_v63, %v247_v43  ;;  %v273_v22 = vadd.f32 %v272_v0, %v271_v50  ;;  %v586_v46 = vsel %vm128_vm2, %v578_v9, 0.0  ;;  %v231_v49 = vld [vmem:[#allocation2 + $0x1a] sm:$0x3]  ;;  %v259_v43 = vld [vmem:[#allocation2 + $0x1c] sm:$0x3] }
  0x31   :  { %v493_v23 = vmul.f32 %v491_v4, %v1029_v14  ;;  %v519_v24 = vmul.f32 %v517_v6, %v1029_v14  ;;  %v639_v25 = vrot.slane %v638_v58, 4  ;;  %v606_v37 = vsel %vm604_vm8, 1.0, %v921_v5 }
  0x32   :  { %v889_v26 = vpop.eup %888  ;;  %v226_v32 = vsel %vm145_vm10, %v223_v19, %v216_v30  ;;  %v250_v35 = vrot.slane %v249_v20, 1  ;;  %v274_v36 = vrot.slane %v273_v22, 1  ;;  %v587_v30 = vrot.slane %v586_v46, 4 }
  0x33   :  { %v891_v38 = vpop.eup %890  ;;  %v495_v41 = vsel %vm128_vm2, %v493_v23, 0.0  ;;  %v521_v29 = vsel %vm128_vm2, %v519_v24, 0.0  ;;  %v228_v33 = vadd.f32 %v226_v32, %v203_v3  ;;  %v484_v42 = vadd.f32 1.0, %v889_v26 }
  0x34   :  { %v496_v44 = vrot.slane %v495_v41, 4  ;;  %v522_v45 = vrot.slane %v521_v29, 4  ;;  %v251_v50 = vadd.f32 %v250_v35, %v249_v20  ;;  %v275_v51 = vadd.f32 %v274_v36, %v273_v22  ;;  %v893_v52 = vpop.eup %892 }
  0x35   :  { %229 = vst [vmem:[#allocation2 + $0x18] sm:$0x3] %v228_v33  ;;  %894 = vrcp.f32 %v484_v42  ;;  %v614_v53 = vsel %vm128_vm2, %v606_v37, 0.0  ;;  %v640_v57 = vadd.f32 %v639_v25, %v638_v58  ;;  %v588_v4 = vadd.f32 %v587_v30, %v586_v46 }
  0x36   :  { %v497_v59 = vadd.f32 %v496_v44, %v495_v41  ;;  %v523_v61 = vadd.f32 %v522_v45, %v521_v29  ;;  %v254_v62 = vsel %vm145_vm10, %v251_v50, %v1185_v39  ;;  %v278_v63 = vsel %vm145_vm10, %v275_v51, %v1180_v31 }
  0x37   :  { %v256_v0 = vadd.f32 %v254_v62, %v231_v49  ;;  %v280_v1 = vadd.f32 %v278_v63, %v259_v43  ;;  %v615_v6 = vrot.slane %v614_v53, 4  ;;  %v1256_v9 = vmul.f32 %v891_v38, %v1038_v17  ;;  %v572_v43 = vld [vmem:[#allocation2 + $0x1e] sm:$0x3] }
  0x38   :  { %v585_v3 = vadd.f32 %v584_v55, %v1187_v40  ;;  %v612_v19 = vrot.slane %v1215_v56, 1  ;;  %v641_v58 = vrot.slane %v640_v57, 2  ;;  %v589_v20 = vrot.slane %v588_v4, 2 }
  0x39   :  { %257 = vst [vmem:[#allocation2 + $0x1a] sm:$0x3] %v256_v0  ;;  %281 = vst [vmem:[#allocation2 + $0x1c] sm:$0x3] %v280_v1  ;;  %v616_v22 = vadd.f32 %v615_v6, %v614_v53  ;;  %v356_v39 = vmul.f32 %v288_v60, %v1033_v16  ;;  %v357_v31 = vsel %vm128_vm2, %v1177_v28, 0.0  ;;  %v498_v23 = vrot.slane %v497_v59, 2 }
  0x3a   :  { %v524_v24 = vrot.slane %v523_v61, 2  ;;  %v642_v46 = vadd.f32 %v641_v58, %v640_v57  ;;  %v358_v25 = vrot.slane %v357_v31, 4  ;;  %v423_v17 = vmul.f32 %v891_v38, %v891_v38  ;;  %v628_v38 = vld [vmem:[#allocation2 + $0x22] sm:$0x3] }
  0x3b   :  { %v590_v26 = vadd.f32 %v589_v20, %v588_v4  ;;  %v617_v32 = vrot.slane %v616_v22, 2  ;;  %v364_v40 = vsel %vm128_vm2, %v356_v39, 0.0  ;;  %v1265_v55 = vmul.f32 %v893_v52, %v1043_v18 }
  0x3c   :  { %v613_v35 = vadd.f32 %v612_v19, %v1215_v56  ;;  %v643_v36 = vrot.slane %v642_v46, 1  ;;  %v359_v37 = vadd.f32 %v358_v25, %v357_v31  ;;  %v424_v60 = vmul.f32 %v893_v52, %v893_v52 }
  0x3d   :  { %v591_v41 = vrot.slane %v590_v26, 1  ;;  %v618_v29 = vadd.f32 %v617_v32, %v616_v22  ;;  %v365_v28 = vrot.slane %v364_v40, 4  ;;  %v1268_v33 = vadd.f32 %v498_v23, %v497_v59 }
  0x3e   :  { %v1270_v42 = vadd.f32 %v524_v24, %v523_v61  ;;  %v644_v44 = vadd.f32 %v643_v36, %v642_v46  ;;  %v360_v45 = vrot.slane %v359_v37, 2  ;;  %v331_v56 = vmul.f32 %v1212_v54, %v1029_v14  ;;  %v600_v61 = vld [vmem:[#allocation2 + $0x20] sm:$0x3] }
  0x3f   :  { %v895_v49 = vpop.eup %894  ;;  %v592_v50 = vadd.f32 %v591_v41, %v590_v26  ;;  %v619_v18 = vrot.slane %v618_v29, 1  ;;  %v366_v51 = vadd.f32 %v365_v28, %v364_v40  ;;  %v332_v58 = vmul.f32 %v1241_v15, %v1033_v16 }
  0x40   :  { %v492_v52 = vmul.f32 %v895_v49, %v1094_v47  ;;  %v518_v30 = vmul.f32 %v895_v49, %v895_v49  ;;  %v647_v53 = vsel %vm145_vm10, %v644_v44, %v1199_v34  ;;  %v695_v57 = vld [vmem:[#allocation2 + $0x1c] sm:$0x3]  ;;  %v361_v59 = vadd.f32 %v360_v45, %v359_v37 }
  0x41   :  { %v595_v62 = vsel %vm145_vm10, %v592_v50, %v585_v3  ;;  %v620_v63 = vadd.f32 %v619_v18, %v618_v29  ;;  %v649_v0 = vadd.f32 %v647_v53, %v628_v38  ;;  %v696_v1 = vsel %vm128_vm2, %v695_v57, 0.0 }
  0x42   :  { %v494_v4 = vmul.f32 %v492_v52, %v1033_v16  ;;  %v520_v6 = vmul.f32 %v518_v30, %v1033_v16  ;;  %v597_v54 = vadd.f32 %v595_v62, %v572_v43  ;;  %697 = vadd.xlane.f32.xlu0 %v696_v1  ;;  %v362_v47 = vrot.slane %v361_v59, 1  ;;  %v354_v43 = vld [vmem:[#allocation2 + $0xa] sm:$0x3] }
  0x43   :  { %v623_v19 = vsel %vm145_vm10, %v620_v63, %v613_v35  ;;  %650 = vst [vmem:[#allocation2 + $0x22] sm:$0x3] %v649_v0  ;;  %v367_v34 = vrot.slane %v366_v51, 2  ;;  %v333_v3 = vsel %vm128_vm2, %v331_v56, 0.0  ;;  %v500_v20 = vrot.slane %v1268_v33, 1 }
  0x44   :  { %v502_v22 = vsel %vm128_vm2, %v494_v4, 0.0  ;;  %v528_v39 = vsel %vm128_vm2, %v520_v6, 0.0  ;;  %598 = vst [vmem:[#allocation2 + $0x1e] sm:$0x3] %v597_v54  ;;  %v625_v31 = vadd.f32 %v623_v19, %v600_v61  ;;  %v334_v25 = vrot.slane %v333_v3, 4 }
  0x45   :  { %v503_v23 = vrot.slane %v502_v22, 4  ;;  %v529_v24 = vrot.slane %v528_v39, 4  ;;  %v368_v46 = vadd.f32 %v367_v34, %v366_v51  ;;  %v363_v26 = vadd.f32 %v362_v47, %v361_v59 }
  0x46   :  { %626 = vst [vmem:[#allocation2 + $0x20] sm:$0x3] %v625_v31  ;;  %v340_v32 = vsel %vm128_vm2, %v332_v58, 0.0  ;;  %v425_v15 = vmul.f32 %v423_v17, %v1029_v14  ;;  %v426_v40 = vmul.f32 %v424_v60, %v1033_v16  ;;  %v335_v41 = vadd.f32 %v334_v25, %v333_v3 }
  0x47   :  { %v504_v35 = vadd.f32 %v503_v23, %v502_v22  ;;  %v530_v36 = vadd.f32 %v529_v24, %v528_v39  ;;  %v369_v37 = vrot.slane %v368_v46, 1  ;;  %v526_v29 = vrot.slane %v1270_v42, 1  ;;  %v516_v39 = vld [vmem:[#allocation2 + $0x14] sm:$0x3] }
  0x48   :  { %v341_v28 = vrot.slane %v340_v32, 4  ;;  %v427_v38 = vsel %vm128_vm2, %v425_v15, 0.0  ;;  %v434_v44 = vsel %vm128_vm2, %v426_v40, 0.0  ;;  %v336_v18 = vrot.slane %v335_v41, 2 }
  0x49   :  { %v505_v45 = vrot.slane %v504_v35, 2  ;;  %v531_v49 = vrot.slane %v530_v36, 2  ;;  %v370_v50 = vadd.f32 %v369_v37, %v368_v46  ;;  %v428_v56 = vrot.slane %v427_v38, 4 }
  0x4a   :  { %v805_v51 = vld [vmem:[#allocation2 + $0x22] sm:$0x3]  ;;  %v342_v17 = vadd.f32 %v341_v28, %v340_v32  ;;  %v435_v60 = vrot.slane %v434_v44, 4  ;;  %v399_v52 = vmul.f32 %v1256_v9, %v1029_v14  ;;  %v337_v62 = vadd.f32 %v336_v18, %v335_v41  ;;  %v328_v32 = vld [vmem:[#allocation2 + $0x8] sm:$0x3] }
  0x4b   :  { %v506_v30 = vadd.f32 %v505_v45, %v504_v35  ;;  %v532_v53 = vadd.f32 %v531_v49, %v530_v36  ;;  %v373_v57 = vsel %vm145_vm10, %v370_v50, %v363_v26  ;;  %v806_v59 = vsel %vm128_vm2, %v805_v51, 0.0  ;;  %v490_v49 = vld [vmem:[#allocation2 + $0x12] sm:$0x3]  ;;  %v687_v51 = vld [vmem:[#allocation2 + $0x18] sm:$0x3] }
  0x4c   :  { %v375_v61 = vadd.f32 %v373_v57, %v354_v43  ;;  %807 = vadd.xlane.f32.xlu0 %v806_v59  ;;  %v343_v63 = vrot.slane %v342_v17, 2  ;;  %v429_v0 = vadd.f32 %v428_v56, %v427_v38  ;;  %v527_v1 = vadd.f32 %v526_v29, %v1270_v42  ;;  %v422_v38 = vld [vmem:[#allocation2 + $0xe] sm:$0x3] }
  0x4d   :  { %v507_v4 = vrot.slane %v506_v30, 1  ;;  %v533_v6 = vrot.slane %v532_v53, 1  ;;  %v436_v54 = vadd.f32 %v435_v60, %v434_v44  ;;  %v501_v47 = vadd.f32 %v500_v20, %v1268_v33 }
  0x4e   :  { %376 = vst [vmem:[#allocation2 + $0xa] sm:$0x3] %v375_v61  ;;  %v338_v9 = vrot.slane %v337_v62, 1  ;;  %v344_v19 = vadd.f32 %v343_v63, %v342_v17  ;;  %v430_v34 = vrot.slane %v429_v0, 2  ;;  %v400_v31 = vmul.f32 %v1265_v55, %v1033_v16 }
  0x4f   :  { %v508_v58 = vadd.f32 %v507_v4, %v506_v30  ;;  %v534_v3 = vadd.f32 %v533_v6, %v532_v53  ;;  %v437_v22 = vrot.slane %v436_v54, 2  ;;  %v401_v42 = vsel %vm128_vm2, %v399_v52, 0.0 }
  0x50   :  { %v339_v23 = vadd.f32 %v338_v9, %v337_v62  ;;  %v345_v24 = vrot.slane %v344_v19, 1  ;;  %v431_v46 = vadd.f32 %v430_v34, %v429_v0  ;;  %v402_v33 = vrot.slane %v401_v42, 4  ;;  %v797_v0 = vld [vmem:[#allocation2 + $0x1e] sm:$0x3]  ;;  %v396_v34 = vld [vmem:[#allocation2 + $0xc] sm:$0x3] }
  0x51   :  { %v438_v25 = vadd.f32 %v437_v22, %v436_v54  ;;  %v537_v26 = vsel %vm145_vm10, %v534_v3, %v527_v1  ;;  %v408_v20 = vsel %vm128_vm2, %v400_v31, 0.0  ;;  %v305_v55 = vmul.f32 %v1197_v48, %v1029_v14 }
  0x52   :  { %v346_v15 = vadd.f32 %v345_v24, %v344_v19  ;;  %v432_v40 = vrot.slane %v431_v46, 1  ;;  %v539_v35 = vadd.f32 %v537_v26, %v516_v39  ;;  %v409_v36 = vrot.slane %v408_v20, 4 }
  0x53   :  { %v439_v37 = vrot.slane %v438_v25, 1  ;;  %v403_v41 = vadd.f32 %v402_v33, %v401_v42  ;;  %v306_v29 = vmul.f32 %v1233_v2, %v1033_v16  ;;  %v511_v43 = vsel %vm145_vm10, %v508_v58, %v501_v47 }
  0x54   :  { %v349_v28 = vsel %vm145_vm10, %v346_v15, %v339_v23  ;;  %v433_v44 = vadd.f32 %v432_v40, %v431_v46  ;;  %540 = vst [vmem:[#allocation2 + $0x14] sm:$0x3] %v539_v35  ;;  %v410_v45 = vadd.f32 %v409_v36, %v408_v20  ;;  %v307_v60 = vsel %vm128_vm2, %v305_v55, 0.0 }
  0x55   :  { %v730_v50 = vld [vmem:[#allocation2 + $0xa] sm:$0x3]  ;;  %v351_v18 = vadd.f32 %v349_v28, %v328_v32  ;;  %v440_v17 = vadd.f32 %v439_v37, %v438_v25  ;;  %v404_v56 = vrot.slane %v403_v41, 2  ;;  %v308_v16 = vrot.slane %v307_v60, 4  ;;  %v302_v32 = vld [vmem:[#allocation2 + $0x6] sm:$0x3] }
  0x56   :  { %v731_v14 = vsel %vm128_vm2, %v730_v50, 0.0  ;;  %v411_v48 = vrot.slane %v410_v45, 2  ;;  %v314_v2 = vsel %vm128_vm2, %v306_v29, 0.0  ;;  %v513_v57 = vadd.f32 %v511_v43, %v490_v49 }
  0x57   :  { %732 = vadd.xlane.f32.xlu1 %v731_v14  ;;  %352 = vst [vmem:[#allocation2 + $0x8] sm:$0x3] %v351_v18  ;;  %v443_v52 = vsel %vm145_vm10, %v440_v17, %v433_v44  ;;  %v405_v30 = vadd.f32 %v404_v56, %v403_v41  ;;  %v315_v53 = vrot.slane %v314_v2, 4  ;;  %v688_v59 = vsel %vm128_vm2, %v687_v51, 0.0 }
  0x58   :  { %v445_v61 = vadd.f32 %v443_v52, %v422_v38  ;;  %v412_v62 = vadd.f32 %v411_v48, %v410_v45  ;;  %v309_v63 = vadd.f32 %v308_v16, %v307_v60  ;;  %514 = vst [vmem:[#allocation2 + $0x12] sm:$0x3] %v513_v57  ;;  %v798_v19 = vsel %vm128_vm2, %v797_v0, 0.0 }
  0x59   :  { %v406_v1 = vrot.slane %v405_v30, 1  ;;  %v316_v4 = vadd.f32 %v315_v53, %v314_v2  ;;  %v850_v37 = vmul.f32 -1.442695, %v1051_v21  ;;  %v851_v41 = vmul.f32 -1.442695, %v1124_v27 }
  0x5a   :  { %446 = vst [vmem:[#allocation2 + $0xe] sm:$0x3] %v445_v61  ;;  %v413_v6 = vrot.slane %v412_v62, 1  ;;  %v310_v54 = vrot.slane %v309_v63, 2 }
  0x5b   :  { %689 = vadd.xlane.f32.xlu1 %v688_v59  ;;  %v407_v47 = vadd.f32 %v406_v1, %v405_v30  ;;  %v317_v9 = vrot.slane %v316_v4, 2  ;;  %v766_v22 = vld [vmem:[#allocation2 + $0x14] sm:$0x3]  ;;  %896 = vpow2.f32 %v850_v37 }
  0x5c   :  { %v414_v58 = vadd.f32 %v413_v6, %v412_v62  ;;  %v311_v3 = vadd.f32 %v310_v54, %v309_v63  ;;  %v767_v26 = vsel %vm128_vm2, %v766_v22, 0.0  ;;  %898 = vpow2.f32 %v851_v41  ;;  %v123_v41 = vld [vmem:[#allocation2] sm:$0x3] }
  0x5d   :  { %v318_v39 = vadd.f32 %v317_v9, %v316_v4 }
  0x5e   :  { %v726_v31 = vld [vmem:[#allocation2 + $0x8] sm:$0x3]  ;;  %v417_v23 = vsel %vm145_vm10, %v414_v58, %v407_v47  ;;  %v312_v24 = vrot.slane %v311_v3, 1 }
  0x5f   :  { %v727_v46 = vsel %vm128_vm2, %v726_v31, 0.0  ;;  %799 = vadd.xlane.f32.xlu1 %v798_v19  ;;  %v419_v42 = vadd.f32 %v417_v23, %v396_v34  ;;  %v319_v25 = vrot.slane %v318_v39, 1 }
  0x60   :  { %728 = vadd.xlane.f32.xlu0 %v727_v46  ;;  %v313_v33 = vadd.f32 %v312_v24, %v311_v3 }
  0x61   :  { %v746_v20 = vld [vmem:[#allocation2 + $0xe] sm:$0x3]  ;;  %420 = vst [vmem:[#allocation2 + $0xc] sm:$0x3] %v419_v42  ;;  %v320_v15 = vadd.f32 %v319_v25, %v318_v39 }
  0x62   :  { %v747_v40 = vsel %vm128_vm2, %v746_v20, 0.0 }
  0x63   :  { %768 = vadd.xlane.f32.xlu1 %v767_v26  ;;  %v323_v35 = vsel %vm145_vm10, %v320_v15, %v313_v33 }
  0x64   :  { %748 = vadd.xlane.f32.xlu0 %v747_v40  ;;  %v325_v36 = vadd.f32 %v323_v35, %v302_v32 }
  0x65   :  { %v897_v55 = vpop.eup %896 }
  0x66   :  { %326 = vst [vmem:[#allocation2 + $0x6] sm:$0x3] %v325_v36  ;;  %v899_v29 = vpop.eup %898  ;;  %v117_v28 = vadd.f32 1.0, %v897_v55 }
  0x67   :  { %v118_v38 = vadd.f32 1.0, %v899_v29 }
  0x68   :  { %900 = vrcp.f32 %v117_v28 }
  0x69   :  { %902 = vrcp.f32 %v118_v38  ;;  %v151_v38 = vld [vmem:[#allocation2 + $0x2] sm:$0x3] }
  0x72   :  { %v901_v45 = vpop.eup %900 }
  0x73   :  { %v903_v43 = vpop.eup %902  ;;  %v124_v18 = vmul.f32 %v901_v45, %v1007_v8  ;;  %v152_v51 = vmul.f32 %v901_v45, %v901_v45 }
  0x74   :  { %v125_v56 = vmul.f32 %v903_v43, %v1012_v10 }
  0x81   :  { %v75_v44 = vpop.permute.xlu0 %74 }
  0x82   :  { %vm81_vm9 = vcmp.ge.f32.partialorder %v1051_v21, %v75_v44  ;;  %v177_v44 = vld [vmem:[#allocation2 + $0x4] sm:$0x3] }
  0x83   :  { %vm83_vm11 = vmor %vm81_vm9, %vm59_vm3 }
  0x84   :  { %vm85_vm12 = vmand %vm83_vm11, %vm61_vm4 }
  0x85   :  { %v79_v49 = vpop.permute.xlu0 %78  ;;  %v87_v50 = vsel %vm85_vm12, 1.0, %v921_v5 }
  0x86   :  { %vm82_vm13 = vcmp.ge.f32.partialorder %v1124_v27, %v79_v49  ;;  %v153_v27 = vmul.f32 %v903_v43, %v903_v43 }
  0x87   :  { %vm84_vm15 = vmor %vm82_vm13, %vm60_vm14 }
  0x88   :  { %vm86_vm0 = vmand %vm84_vm15, %vm62_vm7 }
  0x89   :  { %v88_v16 = vsel %vm86_vm0, 1.0, %v921_v5 }
  0x8c   :  { %v103_v21 = vpop.permute.xlu1 %102 }
  0x8d   :  { %vm107_vm3 = vcmp.eq.s32.totalorder %v103_v21, 1 }
  0x8e   :  { %v109_v17 = vsel %vm107_vm3, %v87_v50, %v1017_v11 }
  0x8f   :  { %v126_v60 = vmul.f32 %v124_v18, %v109_v17  ;;  %v154_v14 = vmul.f32 %v152_v51, %v109_v17  ;;  %v178_v48 = vmul.f32 %v109_v17, %v1007_v8 }
  0x90   :  { %v106_v2 = vpop.permute.xlu1 %105 }
  0x91   :  { %v129_v52 = vsel %vm128_vm2, %v126_v60, 0.0  ;;  %v156_v30 = vsel %vm128_vm2, %v154_v14, 0.0  ;;  %v180_v53 = vsel %vm128_vm2, %v178_v48, 0.0  ;;  %vm108_vm4 = vcmp.eq.s32.totalorder %v106_v2, 1  ;;  %v801_v48 = vld [vmem:[#allocation2 + $0x20] sm:$0x3] }
  0x92   :  { %v130_v57 = vrot.slane %v129_v52, 4  ;;  %v157_v59 = vrot.slane %v156_v30, 4  ;;  %v181_v11 = vrot.slane %v180_v53, 4  ;;  %v110_v61 = vsel %vm108_vm4, %v88_v16, %v1025_v13 }
  0x93   :  { %v127_v62 = vmul.f32 %v125_v56, %v110_v61  ;;  %v155_v63 = vmul.f32 %v153_v27, %v110_v61  ;;  %v179_v8 = vmul.f32 %v110_v61, %v1012_v10  ;;  %v691_v56 = vld [vmem:[#allocation2 + $0x1a] sm:$0x3]  ;;  %v802_v2 = vsel %vm128_vm2, %v801_v48, 0.0 }
  0x94   :  { %v131_v0 = vadd.f32 %v130_v57, %v129_v52  ;;  %v158_v1 = vadd.f32 %v157_v59, %v156_v30  ;;  %v182_v5 = vadd.f32 %v181_v11, %v180_v53  ;;  %v692_v52 = vsel %vm128_vm2, %v691_v56, 0.0  ;;  %v742_v30 = vld [vmem:[#allocation2 + $0xc] sm:$0x3]  ;;  %v722_v53 = vld [vmem:[#allocation2 + $0x6] sm:$0x3] }
  0x95   :  { %v136_v4 = vsel %vm128_vm2, %v127_v62, 0.0  ;;  %v163_v6 = vsel %vm128_vm2, %v155_v63, 0.0  ;;  %v187_v54 = vsel %vm128_vm2, %v179_v8, 0.0  ;;  %v743_v57 = vsel %vm128_vm2, %v742_v30, 0.0  ;;  %v762_v11 = vld [vmem:[#allocation2 + $0x12] sm:$0x3] }
  0x96   :  { %v132_v47 = vrot.slane %v131_v0, 2  ;;  %v159_v9 = vrot.slane %v158_v1, 2  ;;  %v183_v19 = vrot.slane %v182_v5, 2  ;;  %v137_v34 = vrot.slane %v136_v4, 4 }
  0x97   :  { %v164_v58 = vrot.slane %v163_v6, 4  ;;  %v188_v3 = vrot.slane %v187_v54, 4  ;;  %v723_v59 = vsel %vm128_vm2, %v722_v53, 0.0  ;;  %v763_v62 = vsel %vm128_vm2, %v762_v11, 0.0 }
  0x98   :  { %v133_v13 = vadd.f32 %v132_v47, %v131_v0  ;;  %v138_v22 = vadd.f32 %v137_v34, %v136_v4  ;;  %v160_v39 = vadd.f32 %v159_v9, %v158_v1  ;;  %v184_v31 = vadd.f32 %v183_v19, %v182_v5 }
  0x99   :  { %v165_v10 = vadd.f32 %v164_v58, %v163_v6  ;;  %v189_v23 = vadd.f32 %v188_v3, %v187_v54  ;;  %v680_v53 = vsub.s32 1, %v1002_v7 }
  0x9a   :  { %v139_v24 = vrot.slane %v138_v22, 2  ;;  %v134_v25 = vrot.slane %v133_v13, 1  ;;  %v161_v33 = vrot.slane %v160_v39, 1  ;;  %v185_v20 = vrot.slane %v184_v31, 1 }
  0x9b   :  { %v166_v46 = vrot.slane %v165_v10, 2  ;;  %v190_v42 = vrot.slane %v189_v23, 2 }
  0x9c   :  { %v140_v26 = vadd.f32 %v139_v24, %v138_v22  ;;  %v135_v37 = vadd.f32 %v134_v25, %v133_v13  ;;  %v162_v29 = vadd.f32 %v161_v33, %v160_v39  ;;  %v186_v28 = vadd.f32 %v185_v20, %v184_v31 }
  0x9d   :  { %v167_v32 = vadd.f32 %v166_v46, %v165_v10  ;;  %v191_v15 = vadd.f32 %v190_v42, %v189_v23 }
  0x9e   :  { %v141_v40 = vrot.slane %v140_v26, 1 }
  0x9f   :  { %v168_v35 = vrot.slane %v167_v32, 1  ;;  %v192_v36 = vrot.slane %v191_v15, 1 }
  0xa0   :  { %v142_v55 = vadd.f32 %v141_v40, %v140_v26 }
  0xa1   :  { %v169_v45 = vadd.f32 %v168_v35, %v167_v32  ;;  %v193_v49 = vadd.f32 %v192_v36, %v191_v15 }
  0xa2   :  { %v146_v43 = vsel %vm145_vm10, %v142_v55, %v135_v37 }
  0xa3   :  { %v148_v50 = vadd.f32 %v146_v43, %v123_v41  ;;  %v172_v18 = vsel %vm145_vm10, %v169_v45, %v162_v29  ;;  %v196_v51 = vsel %vm145_vm10, %v193_v49, %v186_v28 }
  0xa4   :  { %v174_v21 = vadd.f32 %v172_v18, %v151_v38  ;;  %v198_v17 = vadd.f32 %v196_v51, %v177_v44 }
  0xa5   :  { %149 = vst [vmem:[#allocation2] sm:$0x3] %v148_v50 }
  0xa6   :  { %175 = vst [vmem:[#allocation2 + $0x2] sm:$0x3] %v174_v21  ;;  %199 = vst [vmem:[#allocation2 + $0x4] sm:$0x3] %v198_v17 }
  0xac   :  { %v654_v61 = vld [vmem:[#allocation2] sm:$0x3] }
  0xad   :  { %v662_v60 = vld [vmem:[#allocation2 + $0x4] sm:$0x3]  ;;  %v658_v14 = vld [vmem:[#allocation2 + $0x2] sm:$0x3]  ;;  %v655_v63 = vsel %vm128_vm2, %v654_v61, 0.0 }
  0xae   :  { %v663_v27 = vsel %vm128_vm2, %v662_v60, 0.0  ;;  %v659_v16 = vsel %vm128_vm2, %v658_v14, 0.0  ;;  %vm684_vm2 = vcmask 0  }
  0xaf   :  { %664 = vadd.xlane.f32.xlu0 %v663_v27  ;;  %660 = vadd.xlane.f32.xlu1 %v659_v16 }
  0xb3   :  { %803 = vadd.xlane.f32.xlu0 %v802_v2  ;;  %693 = vadd.xlane.f32.xlu1 %v692_v52 }
  0xb5   :  { %v753_v8 = vpop.xlane.xlu0 %752 }
  0xb7   :  { %744 = vadd.xlane.f32.xlu0 %v743_v57  ;;  %724 = vadd.xlane.f32.xlu1 %v723_v59 }
  0xbb   :  { %764 = vadd.xlane.f32.xlu1 %v763_v62  ;;  %656 = vadd.xlane.f32.xlu0 %v655_v63 }
  0xbc   :  { %v773_v0 = vpop.xlane.xlu0 %772 }
  0xcf   :  { %v1359_v1 = vpop.xlane.xlu0 %697 }
  0xd9   :  { %v808_v4 = vpop.xlane.xlu0 %807 }
  0xe4   :  { %v733_v5 = vpop.xlane.xlu1 %732 }
  0xe8   :  { %v1361_v6 = vpop.xlane.xlu1 %689 }
  0xe9   :  { %v700_v13 = vsub.f32 %v1359_v1, %v1361_v6 }
  0xeb   :  { %v701_v10 = vadd.f32 1e-06, %v700_v13 }
  0xec   :  { %v800_v47 = vpop.xlane.xlu1 %799 }
  0xed   :  { %v729_v54 = vpop.xlane.xlu0 %728  ;;  %v810_v31 = vsub.f32 %v808_v4, %v800_v47 }
  0xee   :  { %v735_v19 = vadd.f32 %v733_v5, %v729_v54 }
  0xef   :  { %v811_v25 = vadd.f32 1e-06, %v810_v31 }
  0xf0   :  { %v769_v58 = vpop.xlane.xlu1 %768  ;;  %v736_v3 = vadd.f32 0.002, %v735_v19 }
  0xf1   :  { %v749_v9 = vpop.xlane.xlu0 %748  ;;  %v775_v39 = vadd.f32 %v773_v0, %v769_v58 }
  0xf2   :  { %v755_v34 = vadd.f32 %v753_v8, %v749_v9  ;;  %904 = vrcp.f32 %v736_v3 }
  0xf3   :  { %v776_v23 = vadd.f32 0.002, %v775_v39 }
  0xf4   :  { %v756_v22 = vadd.f32 0.002, %v755_v34 }
  0xf6   :  { %906 = vrcp.f32 %v756_v22 }
  0xf7   :  { %908 = vrcp.f32 %v701_v10 }
  0xf8   :  { %910 = vrcp.f32 %v776_v23 }
  0xfc   :  { %v905_v36 = vpop.eup %904 }
 0x100   :  { %v907_v55 = vpop.eup %906 }
 0x101   :  { %v909_v45 = vpop.eup %908 }
 0x102   :  { %v911_v51 = vpop.eup %910 }
 0x13c   :  { %v665_v24 = vpop.xlane.xlu0 %664  ;;  %v661_v46 = vpop.xlane.xlu1 %660 }
 0x13d   :  { %v667_v42 = vadd.f32 %v665_v24, %v661_v46 }
 0x13f   :  { %v668_v26 = vadd.f32 0.002, %v667_v42 }
 0x140   :  { %v804_v33 = vpop.xlane.xlu0 %803  ;;  %v694_v20 = vpop.xlane.xlu1 %693 }
 0x141   :  { %912 = vrcp.f32 %v668_v26  ;;  %v814_v32 = vadd.f32 1e-06, %v804_v33  ;;  %v704_v15 = vadd.f32 1e-06, %v694_v20  ;;  %v809_v21 = vsub.f32 %v808_v4, %v804_v33 }
 0x142   :  { %914 = vrcp.f32 %v811_v25  ;;  %v699_v56 = vsub.f32 %v1359_v1, %v694_v20 }
 0x143   :  { %916 = vrcp.f32 %v814_v32 }
 0x144   :  { %918 = vrcp.f32 %v704_v15  ;;  %v745_v40 = vpop.xlane.xlu0 %744  ;;  %v725_v35 = vpop.xlane.xlu1 %724  ;;  %v703_v61 = vmul.f32 %v909_v45, %v699_v56 }
 0x145   :  { %v754_v37 = vmul.f32 2.0, %v745_v40  ;;  %v734_v41 = vmul.f32 2.0, %v725_v35 }
 0x147   :  { %v758_v29 = vmul.f32 %v907_v55, %v754_v37  ;;  %v738_v28 = vmul.f32 %v905_v36, %v734_v41 }
 0x148   :  { %v765_v38 = vpop.xlane.xlu1 %764  ;;  %v657_v44 = vpop.xlane.xlu0 %656 }
 0x149   :  { %v759_v49 = vsub.f32 1.0, %v758_v29  ;;  %v739_v43 = vsub.f32 1.0, %v738_v28  ;;  %v774_v50 = vmul.f32 2.0, %v765_v38  ;;  %v666_v18 = vmul.f32 2.0, %v657_v44 }
 0x14b   :  { %v913_v17 = vpop.eup %912  ;;  %v760_v60 = vmul.f32 0.3, %v759_v49  ;;  %v740_v14 = vmul.f32 0.3, %v739_v43  ;;  %v778_v48 = vmul.f32 %v911_v51, %v774_v50 }
 0x14c   :  { %v915_v27 = vpop.eup %914  ;;  %v670_v16 = vmul.f32 %v913_v17, %v666_v18 }
 0x14d   :  { %v917_v2 = vpop.eup %916  ;;  %v779_v52 = vsub.f32 1.0, %v778_v48  ;;  %v813_v57 = vmul.f32 %v915_v27, %v809_v21  ;;  %v761_v63 = vadd.f32 %v760_v60, %v740_v14 }
 0x14e   :  { %v919_v30 = vpop.eup %918  ;;  %v816_v59 = vmul.f32 %v917_v2, %v800_v47  ;;  %v671_v11 = vsub.f32 1.0, %v670_v16 }
 0x14f   :  { %v706_v62 = vmul.f32 %v919_v30, %v1361_v6  ;;  %v780_v8 = vmul.f32 0.3, %v779_v52 }
 0x150   :  { %v817_v0 = vadd.f32 %v816_v59, %v813_v57  ;;  %v672_v1 = vmul.f32 0.7, %v671_v11 }
 0x151   :  { %v707_v5 = vadd.f32 %v706_v62, %v703_v61  ;;  %v781_v4 = vadd.f32 %v780_v8, %v761_v63 }
 0x152   :  { %v818_v54 = vmul.f32 0.5, %v817_v0  ;;  %v677_v9 = vrot.slane %v672_v1, %v1020_v12  ;;  %v681_v19 = vrot.slane %v672_v1, %v680_v53 }
 0x153   :  { %v708_v34 = vmul.f32 0.5, %v707_v5  ;;  %v783_v58 = vmul.f32 0.33333334, %v781_v4 }
 0x154   :  { %v823_v7 = vrot.slane %v818_v54, %v1020_v12  ;;  %v827_v47 = vrot.slane %v818_v54, %v680_v53  ;;  %685 = vst.msk [vmem:[%s1410_s6] sm:$0x1] %vm684_vm2, %v677_v9  ;;  %686 = vst.msk [vmem:[%s1410_s6 + $0x1] sm:$0x1] %vm684_vm2, %v681_v19 }
 0x155   :  { %v713_v6 = vrot.slane %v708_v34, %v1020_v12  ;;  %v717_v3 = vrot.slane %v708_v34, %v680_v53  ;;  %v788_v13 = vrot.slane %v783_v58, %v1020_v12  ;;  %v792_v22 = vrot.slane %v783_v58, %v680_v53 }
 0x156   :  { %830 = vst.msk [vmem:[%s1411_s9] sm:$0x1] %vm684_vm2, %v823_v7  ;;  %831 = vst.msk [vmem:[%s1411_s9 + $0x1] sm:$0x1] %vm684_vm2, %v827_v47 }
 0x157   :  { %720 = vst.msk [vmem:[%s1412_s7] sm:$0x1] %vm684_vm2, %v713_v6  ;;  %721 = vst.msk [vmem:[%s1412_s7 + $0x1] sm:$0x1] %vm684_vm2, %v717_v3 }
 0x158   :  { %795 = vst.msk [vmem:[%s1413_s8] sm:$0x1] %vm684_vm2, %v788_v13  ;;  %796 = vst.msk [vmem:[%s1413_s8 + $0x1] sm:$0x1] %vm684_vm2, %v792_v22 }

</bundles_post_ra>
